<compile_context>
chip_gen: v7x
topology: tpu7x:2x2x1
jax: 0.10.0
libtpu: 0.0.40
codegen_flags: <defaults>
</compile_context>

<pallas_src>
import jax
import jax.numpy as jnp
from jax.experimental import pallas as pl
from jax.experimental.pallas import tpu as pltpu

INPUT_SIZE = 784
PADDED_INPUT = 896            # 7 * 128 -> lane-dense x tile / layer-1 K dim
HIDDEN_SIZES = [512, 256, 128]
NUM_CLASSES = 10
PADDED_CLASSES = 128          # lane-dense output (slice back to 10 in wrapper)
BN_EPS = 1e-5
WEIGHT_DTYPE = jnp.bfloat16   # bf16 MXU fast path on v5e/v6e/v7x
ACT_DTYPE = jnp.bfloat16      # activations + output in bf16; accumulation f32


def _round_up(v, m):
    return ((v + m - 1) // m) * m


def _mlp_kernel(x_ref,
                w1_ref, b1_ref,
                w2_ref, b2_ref,
                w3_ref, b3_ref,
                w4_ref, b4_ref,
                o_ref):
    """Fused 4-layer MLP for one batch tile: (Linear+ReLU) x3 + Linear.

    BN is pre-folded into the weights/biases. Weights and activations are
    bf16; every dot accumulates in f32; output stored as bf16.
    """
    wdt = w1_ref.dtype

    h = x_ref[...]                                   # already bf16

    # Layer 1: 896(=padded 784) -> 512 (BN folded in)
    h = jnp.dot(h, w1_ref[...], preferred_element_type=jnp.float32) + b1_ref[...]
    h = jnp.maximum(h, 0.0).astype(wdt)

    # Layer 2: 512 -> 256
    h = jnp.dot(h, w2_ref[...], preferred_element_type=jnp.float32) + b2_ref[...]
    h = jnp.maximum(h, 0.0).astype(wdt)

    # Layer 3: 256 -> 128
    h = jnp.dot(h, w3_ref[...], preferred_element_type=jnp.float32) + b3_ref[...]
    h = jnp.maximum(h, 0.0).astype(wdt)

    # Output layer: 128 -> 128 (zero-padded from 10; no BN / ReLU / dropout)
    out = jnp.dot(h, w4_ref[...], preferred_element_type=jnp.float32) + b4_ref[...]
    o_ref[...] = out.astype(o_ref.dtype)


def feedforward_nn_forward(x_nchw, params, *, block_m=512):
    """Flatten NCHW input, tile the batch, and run the fused Pallas kernel."""
    n = x_nchw.shape[0]
    x = x_nchw.reshape(n, -1)                        # x.view(x.size(0), -1)
    assert x.shape[1] == INPUT_SIZE

    # Batch tile: multiple of 8 sublanes, as big as block_m allows, but keep
    # >= 2 grid steps whenever possible so "parallel" shards across v7x's TCs.
    block_m = max(8, (block_m // 8) * 8)
    n_pad = max(8, _round_up(n, 8))
    tm = min(block_m, n_pad)
    if n_pad >= 16:
        half = _round_up((n_pad + 1) // 2, 8)
        tm = min(tm, half)
    n_pad = _round_up(n_pad, tm)

    # bf16 activations + zero-pad batch rows and feature dim 784 -> 896.
    x = x.astype(ACT_DTYPE)
    x = jnp.pad(x, ((0, n_pad - n), (0, PADDED_INPUT - INPUT_SIZE)))

    w1, b1, w2, b2, w3, b3, w4, b4 = params

    def row_map(i):       # activation / output tiles march down the batch
        return (i, 0)

    def const_map(i):     # weights & biases stay resident (same block always)
        return (0, 0)

    in_specs = [pl.BlockSpec((tm, PADDED_INPUT), row_map)]
    for p in (w1, b1, w2, b2, w3, b3, w4, b4):
        in_specs.append(
            pl.BlockSpec(p.shape, const_map, pipeline_mode=pl.Buffered(1)))

    out = pl.pallas_call(
        _mlp_kernel,
        out_shape=jax.ShapeDtypeStruct((n_pad, PADDED_CLASSES), ACT_DTYPE),
        grid=(n_pad // tm,),
        in_specs=in_specs,
        out_specs=pl.BlockSpec((tm, PADDED_CLASSES), row_map),
        compiler_params=pltpu.CompilerParams(
            dimension_semantics=("parallel",),       # shards tiles across v7x TCs
            vmem_limit_bytes=32 * 1024 * 1024),      # ample; safe on v5e/v6e/v7x
    )(x, w1, b1, w2, b2, w3, b3, w4, b4)

    return out[:n, :NUM_CLASSES]


def init_params(key):
    """PyTorch-style uniform Linear init; BatchNorm (eval defaults) folded in.

    Returns (w1, b1, w2, b2, w3, b3, w4, b4) with BN-folded bf16 weights in
    (in_features, out_features) layout and f32 biases. Layer-1 rows are
    zero-padded 784 -> 896; the final layer is zero-padded to 128 out columns.
    """
    params = []
    sizes = [INPUT_SIZE] + HIDDEN_SIZES
    keys = jax.random.split(key, len(HIDDEN_SIZES) + 1)

    for i, (fan_in, fan_out) in enumerate(zip(sizes[:-1], sizes[1:])):
        kw, kb = jax.random.split(keys[i])
        bound = 1.0 / jnp.sqrt(fan_in)
        w = jax.random.uniform(kw, (fan_in, fan_out), jnp.float32, -bound, bound)
        b = jax.random.uniform(kb, (1, fan_out), jnp.float32, -bound, bound)
        # BatchNorm1d eval defaults: gamma=1, beta=0, running_mean=0, running_var=1.
        gamma = jnp.ones((1, fan_out), jnp.float32)
        beta = jnp.zeros((1, fan_out), jnp.float32)
        running_mean = jnp.zeros((1, fan_out), jnp.float32)
        running_var = jnp.ones((1, fan_out), jnp.float32)
        scale = gamma / jnp.sqrt(running_var + BN_EPS)
        shift = beta - running_mean * scale
        # Fold BN into the Linear: W' = W * scale (per out column), b' = b*scale + shift.
        w_fold = w * scale
        b_fold = (b * scale + shift).astype(jnp.float32)
        if i == 0:  # zero-pad the K dim of layer 1 to match the padded input
            w_fold = jnp.pad(w_fold, ((0, PADDED_INPUT - INPUT_SIZE), (0, 0)))
        params.extend([w_fold.astype(WEIGHT_DTYPE), b_fold])

    # Final linear: 128 -> 10, zero-padded to 128 output columns (lane-dense).
    kw, kb = jax.random.split(keys[-1])
    fan_in = HIDDEN_SIZES[-1]
    bound = 1.0 / jnp.sqrt(fan_in)
    w4 = jax.random.uniform(kw, (fan_in, NUM_CLASSES), jnp.float32, -bound, bound)
    b4 = jax.random.uniform(kb, (1, NUM_CLASSES), jnp.float32, -bound, bound)
    w4 = jnp.pad(w4, ((0, 0), (0, PADDED_CLASSES - NUM_CLASSES))).astype(WEIGHT_DTYPE)
    b4 = jnp.pad(b4, ((0, 0), (0, PADDED_CLASSES - NUM_CLASSES))).astype(jnp.float32)
    params.extend([w4, b4])
    return tuple(params)


def reference_forward(x_nchw, params):
    """Pure-JAX reference mirroring the kernel math (bf16 acts/weights, f32 accum)."""
    n = x_nchw.shape[0]
    x = x_nchw.reshape(n, -1).astype(ACT_DTYPE)
    x = jnp.pad(x, ((0, 0), (0, PADDED_INPUT - INPUT_SIZE)))
    w1, b1, w2, b2, w3, b3, w4, b4 = params
    wdt = w1.dtype

    def dense(h, w, b):
        return jnp.dot(h.astype(wdt), w, preferred_element_type=jnp.float32) + b

    h = jnp.maximum(dense(x, w1, b1), 0.0)
    h = jnp.maximum(dense(h, w2, b2), 0.0)
    h = jnp.maximum(dense(h, w3, b3), 0.0)
    out = dense(h, w4, b4).astype(ACT_DTYPE)
    return out[:, :NUM_CLASSES]


if __name__ == "__main__":
    key = jax.random.PRNGKey(0)
    k_params, k_x = jax.random.split(key)

    params = init_params(k_params)
    # NCHW input: batch=2, channels=4, spatial=14x14 -> flattens to 784.
    x = jax.random.normal(k_x, (2, 4, 14, 14), jnp.float32)

    out = feedforward_nn_forward(x, params)
    out = jax.block_until_ready(out)

    ref = reference_forward(x, params)
    assert out.shape == (2, NUM_CLASSES)
    assert jnp.allclose(out.astype(jnp.float32), ref.astype(jnp.float32),
                        atol=2e-2, rtol=2e-2)

    print("KERNEL_OK")
</pallas_src>

<mosaic_0001>
module attributes {stable_mosaic.version = 11 : i64} {
  func.func @_mlp_kernel(%arg0: i32, %arg1: memref<8x896xbf16, #tpu.memory_space<vmem>>, %arg2: memref<896x512xbf16, #tpu.memory_space<vmem>>, %arg3: memref<1x512xf32, #tpu.memory_space<vmem>>, %arg4: memref<512x256xbf16, #tpu.memory_space<vmem>>, %arg5: memref<1x256xf32, #tpu.memory_space<vmem>>, %arg6: memref<256x128xbf16, #tpu.memory_space<vmem>>, %arg7: memref<1x128xf32, #tpu.memory_space<vmem>>, %arg8: memref<128x128xbf16, #tpu.memory_space<vmem>>, %arg9: memref<1x128xf32, #tpu.memory_space<vmem>>, %arg10: memref<8x128xbf16, #tpu.memory_space<vmem>>) attributes {dimension_semantics = [#tpu.dimension_semantics<parallel>], iteration_bounds = array<i64: 1>, scalar_prefetch = 0 : i64, scratch_operands = 0 : i64, tpu.core_type = #tpu.core_type<tc>, window_params = [{transform_indices = @transform_0, window_bounds = array<i64: 8, 896>}, {pipeline_mode = #tpu.pipeline_mode<synchronous>, transform_indices = @transform_1, window_bounds = array<i64: 896, 512>}, {pipeline_mode = #tpu.pipeline_mode<synchronous>, transform_indices = @transform_2, window_bounds = array<i64: 1, 512>}, {pipeline_mode = #tpu.pipeline_mode<synchronous>, transform_indices = @transform_3, window_bounds = array<i64: 512, 256>}, {pipeline_mode = #tpu.pipeline_mode<synchronous>, transform_indices = @transform_4, window_bounds = array<i64: 1, 256>}, {pipeline_mode = #tpu.pipeline_mode<synchronous>, transform_indices = @transform_5, window_bounds = array<i64: 256, 128>}, {pipeline_mode = #tpu.pipeline_mode<synchronous>, transform_indices = @transform_6, window_bounds = array<i64: 1, 128>}, {pipeline_mode = #tpu.pipeline_mode<synchronous>, transform_indices = @transform_7, window_bounds = array<i64: 128, 128>}, {pipeline_mode = #tpu.pipeline_mode<synchronous>, transform_indices = @transform_8, window_bounds = array<i64: 1, 128>}, {transform_indices = @transform_9, window_bounds = array<i64: 8, 128>}]} {
    %c0 = arith.constant 0 : index
    %c0_0 = arith.constant 0 : index
    %0 = vector.load %arg1[%c0, %c0_0] : memref<8x896xbf16, #tpu.memory_space<vmem>>, vector<8x896xbf16>
    %c0_1 = arith.constant 0 : index
    %c0_2 = arith.constant 0 : index
    %1 = vector.load %arg2[%c0_1, %c0_2] : memref<896x512xbf16, #tpu.memory_space<vmem>>, vector<896x512xbf16>
    %cst = arith.constant dense<0.000000e+00> : vector<8x512xf32>
    %2 = tpu.matmul %0, %1, %cst {dimension_numbers = #tpu.dot_dimension_numbers<[1], [0], [0], [1], [0, 0, 1, 1], [], []>} : vector<8x896xbf16>, vector<896x512xbf16>, vector<8x512xf32> -> vector<8x512xf32>
    %c0_3 = arith.constant 0 : index
    %c0_4 = arith.constant 0 : index
    %3 = vector.load %arg3[%c0_3, %c0_4] : memref<1x512xf32, #tpu.memory_space<vmem>>, vector<1x512xf32>
    %4 = vector.broadcast %3 : vector<1x512xf32> to vector<8x512xf32>
    %5 = arith.addf %2, %4 : vector<8x512xf32>
    %cst_5 = arith.constant 0.000000e+00 : f32
    %6 = vector.broadcast %cst_5 : f32 to vector<8x512xf32>
    %7 = arith.maximumf %5, %6 : vector<8x512xf32>
    %8 = arith.truncf %7 : vector<8x512xf32> to vector<8x512xbf16>
    %c0_6 = arith.constant 0 : index
    %c0_7 = arith.constant 0 : index
    %9 = vector.load %arg4[%c0_6, %c0_7] : memref<512x256xbf16, #tpu.memory_space<vmem>>, vector<512x256xbf16>
    %cst_8 = arith.constant dense<0.000000e+00> : vector<8x256xf32>
    %10 = tpu.matmul %8, %9, %cst_8 {dimension_numbers = #tpu.dot_dimension_numbers<[1], [0], [0], [1], [0, 0, 1, 1], [], []>} : vector<8x512xbf16>, vector<512x256xbf16>, vector<8x256xf32> -> vector<8x256xf32>
    %c0_9 = arith.constant 0 : index
    %c0_10 = arith.constant 0 : index
    %11 = vector.load %arg5[%c0_9, %c0_10] : memref<1x256xf32, #tpu.memory_space<vmem>>, vector<1x256xf32>
    %12 = vector.broadcast %11 : vector<1x256xf32> to vector<8x256xf32>
    %13 = arith.addf %10, %12 : vector<8x256xf32>
    %cst_11 = arith.constant 0.000000e+00 : f32
    %14 = vector.broadcast %cst_11 : f32 to vector<8x256xf32>
    %15 = arith.maximumf %13, %14 : vector<8x256xf32>
    %16 = arith.truncf %15 : vector<8x256xf32> to vector<8x256xbf16>
    %c0_12 = arith.constant 0 : index
    %c0_13 = arith.constant 0 : index
    %17 = vector.load %arg6[%c0_12, %c0_13] : memref<256x128xbf16, #tpu.memory_space<vmem>>, vector<256x128xbf16>
    %cst_14 = arith.constant dense<0.000000e+00> : vector<8x128xf32>
    %18 = tpu.matmul %16, %17, %cst_14 {dimension_numbers = #tpu.dot_dimension_numbers<[1], [0], [0], [1], [0, 0, 1, 1], [], []>} : vector<8x256xbf16>, vector<256x128xbf16>, vector<8x128xf32> -> vector<8x128xf32>
    %c0_15 = arith.constant 0 : index
    %c0_16 = arith.constant 0 : index
    %19 = vector.load %arg7[%c0_15, %c0_16] : memref<1x128xf32, #tpu.memory_space<vmem>>, vector<1x128xf32>
    %20 = vector.broadcast %19 : vector<1x128xf32> to vector<8x128xf32>
    %21 = arith.addf %18, %20 : vector<8x128xf32>
    %cst_17 = arith.constant 0.000000e+00 : f32
    %22 = vector.broadcast %cst_17 : f32 to vector<8x128xf32>
    %23 = arith.maximumf %21, %22 : vector<8x128xf32>
    %24 = arith.truncf %23 : vector<8x128xf32> to vector<8x128xbf16>
    %c0_18 = arith.constant 0 : index
    %c0_19 = arith.constant 0 : index
    %25 = vector.load %arg8[%c0_18, %c0_19] : memref<128x128xbf16, #tpu.memory_space<vmem>>, vector<128x128xbf16>
    %cst_20 = arith.constant dense<0.000000e+00> : vector<8x128xf32>
    %26 = tpu.matmul %24, %25, %cst_20 {dimension_numbers = #tpu.dot_dimension_numbers<[1], [0], [0], [1], [0, 0, 1, 1], [], []>} : vector<8x128xbf16>, vector<128x128xbf16>, vector<8x128xf32> -> vector<8x128xf32>
    %c0_21 = arith.constant 0 : index
    %c0_22 = arith.constant 0 : index
    %27 = vector.load %arg9[%c0_21, %c0_22] : memref<1x128xf32, #tpu.memory_space<vmem>>, vector<1x128xf32>
    %28 = vector.broadcast %27 : vector<1x128xf32> to vector<8x128xf32>
    %29 = arith.addf %26, %28 : vector<8x128xf32>
    %30 = arith.truncf %29 : vector<8x128xf32> to vector<8x128xbf16>
    %c0_23 = arith.constant 0 : index
    %c0_24 = arith.constant 0 : index
    %31 = vector.load %arg10[%c0_23, %c0_24] : memref<8x128xbf16, #tpu.memory_space<vmem>>, vector<8x128xbf16>
    tpu.vector_store %arg10[%c0_23, %c0_24], %30 {strides = array<i32>} : memref<8x128xbf16, #tpu.memory_space<vmem>>, vector<8x128xbf16>,
    return
  }
  func.func @transform_0(%arg0: i32) -> (i32, i32) {
    %c0_i32 = arith.constant 0 : i32
    %c0_i32_0 = arith.constant 0 : i32
    return %arg0, %c0_i32 : i32, i32
  }
  func.func @transform_1(%arg0: i32) -> (i32, i32) {
    %c0_i32 = arith.constant 0 : i32
    %c0_i32_0 = arith.constant 0 : i32
    %c0_i32_1 = arith.constant 0 : i32
    return %c0_i32, %c0_i32_0 : i32, i32
  }
  func.func @transform_2(%arg0: i32) -> (i32, i32) {
    %c0_i32 = arith.constant 0 : i32
    %c0_i32_0 = arith.constant 0 : i32
    %c0_i32_1 = arith.constant 0 : i32
    return %c0_i32, %c0_i32_0 : i32, i32
  }
  func.func @transform_3(%arg0: i32) -> (i32, i32) {
    %c0_i32 = arith.constant 0 : i32
    %c0_i32_0 = arith.constant 0 : i32
    %c0_i32_1 = arith.constant 0 : i32
    return %c0_i32, %c0_i32_0 : i32, i32
  }
  func.func @transform_4(%arg0: i32) -> (i32, i32) {
    %c0_i32 = arith.constant 0 : i32
    %c0_i32_0 = arith.constant 0 : i32
    %c0_i32_1 = arith.constant 0 : i32
    return %c0_i32, %c0_i32_0 : i32, i32
  }
  func.func @transform_5(%arg0: i32) -> (i32, i32) {
    %c0_i32 = arith.constant 0 : i32
    %c0_i32_0 = arith.constant 0 : i32
    %c0_i32_1 = arith.constant 0 : i32
    return %c0_i32, %c0_i32_0 : i32, i32
  }
  func.func @transform_6(%arg0: i32) -> (i32, i32) {
    %c0_i32 = arith.constant 0 : i32
    %c0_i32_0 = arith.constant 0 : i32
    %c0_i32_1 = arith.constant 0 : i32
    return %c0_i32, %c0_i32_0 : i32, i32
  }
  func.func @transform_7(%arg0: i32) -> (i32, i32) {
    %c0_i32 = arith.constant 0 : i32
    %c0_i32_0 = arith.constant 0 : i32
    %c0_i32_1 = arith.constant 0 : i32
    return %c0_i32, %c0_i32_0 : i32, i32
  }
  func.func @transform_8(%arg0: i32) -> (i32, i32) {
    %c0_i32 = arith.constant 0 : i32
    %c0_i32_0 = arith.constant 0 : i32
    %c0_i32_1 = arith.constant 0 : i32
    return %c0_i32, %c0_i32_0 : i32, i32
  }
  func.func @transform_9(%arg0: i32) -> (i32, i32) {
    %c0_i32 = arith.constant 0 : i32
    %c0_i32_0 = arith.constant 0 : i32
    return %arg0, %c0_i32 : i32, i32
  }
}

</mosaic_0001>

<bundles_post_ra>
// kernel: tpu_custom_call.1
= control target key start
LH: loop header
LB: loop body
LE: loop exit
PB: predicated region body
PF: predicated region fallthrough
CT: control target
= control target key end

     0   :  { %14 = vsyncpa [#allocation3], 0  ;;  %s3855_s0 = inlined_call_operand.hbm [shape: bf16[8,896], index: 0, kind: input, shape index: {}]   ;;  %s3856_s1 = inlined_call_operand.hbm [shape: bf16[896,512], index: 1, kind: input, shape index: {}]   ;;  %s3857_s2 = inlined_call_operand.vmem [shape: f32[1,512], index: 2, kind: input, shape index: {}]   ;;  %s3858_s3 = inlined_call_operand.hbm [shape: bf16[512,256], index: 3, kind: input, shape index: {}]   ;;  %s3859_s4 = inlined_call_operand.vmem [shape: f32[1,256], index: 4, kind: input, shape index: {}]   ;;  %s3860_s5 = inlined_call_operand.hbm [shape: bf16[256,128], index: 5, kind: input, shape index: {}]   ;;  %s3861_s6 = inlined_call_operand.vmem [shape: f32[1,128], index: 6, kind: input, shape index: {}]   ;;  %s3862_s7 = inlined_call_operand.hbm [shape: bf16[128,128], index: 7, kind: input, shape index: {}]   ;;  %s3863_s8 = inlined_call_operand.vmem [shape: f32[1,128], index: 8, kind: input, shape index: {}]   ;;  %s3864_s9 = inlined_call_operand.hbm [shape: bf16[8,128], index: 9, kind: output, shape index: {}]  }
   0x1   :  { %15 = vsyncpa [#allocation6], 0 }
   0x2   :  { %16 = vsyncpa [#allocation9], 0 }
   0x3   :  { %17 = vsyncpa [#allocation4], 0  ;;  %s3643_s30 = smov [#allocation5]   ;;  %s3503_s13 = scalar_lea.hbm %s3856_s1, 28672 }
   0x4   :  { %s33_s10 = sshll.u32 %s3643_s30, 4  ;;  %p3504_p0 = scmp.ne.s32.totalorder %s3856_s1, %s3503_s13  ;;  %s34_s10 = int_to_ptr.vmem [resolvable:$true] %s33_s10 }
   0x5   :  { %p3507_p1 = scmp.lt.u32.totalorder %s3503_s13, %s3856_s1 }
   0x7   :  { %p3509_p2 = pnand %p3507_p1, %p3504_p0 }
   0x9   :  { %3512 = shalt.err (!%p3509_p2)
}
   0xa   :  { %s3513_s18 = scalar_lea.vmem %s34_s10, 28672  ;;  %p3518_p4 = scmp.lt.s32.totalorder %s34_s10, %s34_s10 }
   0xb   :  { %p3514_p3 = scmp.ne.s32.totalorder %s34_s10, %s3513_s18  ;;  %p3519_p5 = scmp.lt.s32.totalorder %s3513_s18, %s3513_s18 }
   0xd   :  { %p3520_p6 = por %p3519_p5, %p3518_p4 }
   0xf   :  { %p3521_p7 = pnand %p3520_p6, %p3514_p3 }
  0x11   :  { %3524 = shalt.err (!%p3521_p7)
}
  0x12   :  { %s3644_s19 = smov 256   ;;  %s3645_s20 = smov 16  }
  0x13   :  { %39 = dma.hbm_to_vmem [thread:$0]  %s3856_s1, 28672, %s34_s10, [#allocation6], %s3644_s19, %s3644_s19, %s3645_s20  }
  0x14   :  { %s3646_s23 = smov [#allocation8]   ;;  %s3525_s27 = scalar_lea.hbm %s3860_s5, 2048 }
  0x15   :  { %s61_s24 = sshll.u32 %s3646_s23, 4  ;;  %p3526_p8 = scmp.ne.s32.totalorder %s3860_s5, %s3525_s27  ;;  %s62_s24 = int_to_ptr.vmem [resolvable:$true] %s61_s24 }
  0x16   :  { %p3529_p9 = scmp.lt.u32.totalorder %s3525_s27, %s3860_s5 }
  0x18   :  { %p3531_p10 = pnand %p3529_p9, %p3526_p8 }
  0x1a   :  { %3534 = shalt.err (!%p3531_p10)
}
  0x1b   :  { %s3535_s12 = scalar_lea.vmem %s62_s24, 2048  ;;  %p3540_p12 = scmp.lt.s32.totalorder %s62_s24, %s62_s24 }
  0x1c   :  { %p3536_p11 = scmp.ne.s32.totalorder %s62_s24, %s3535_s12  ;;  %p3541_p13 = scmp.lt.s32.totalorder %s3535_s12, %s3535_s12 }
  0x1e   :  { %p3542_p0 = por %p3541_p13, %p3540_p12 }
  0x20   :  { %p3543_p1 = pnand %p3542_p0, %p3536_p11 }
  0x22   :  { %3546 = shalt.err (!%p3543_p1)
}
  0x23   :  { %s3647_s1 = smov 64   ;;  %s3648_s10 = smov 4  }
  0x24   :  { %67 = dma.hbm_to_vmem [thread:$0]  %s3860_s5, 2048, %s62_s24, [#allocation9], %s3647_s1, %s3647_s1, %s3648_s10  }
  0x25   :  { %s3649_s15 = smov [#allocation2]   ;;  %s3650_s17 = smov [#allocation7]  }
  0x26   :  { %s24_s16 = sshll.u32 %s3649_s15, 4  ;;  %s47_s18 = sshll.u32 %s3650_s17, 4  ;;  %s25_s16 = int_to_ptr.vmem [resolvable:$true] %s24_s16  ;;  %s3735_s18 = int_to_ptr.vmem [resolvable:$true] %s47_s18 }
  0x27   :  { %s3547_s21 = scalar_lea.hbm %s3855_s0, 448 }
  0x28   :  { %p3548_p2 = scmp.ne.s32.totalorder %s3855_s0, %s3547_s21  ;;  %p3551_p3 = scmp.lt.u32.totalorder %s3547_s21, %s3855_s0 }
  0x2a   :  { %p3553_p4 = pnand %p3551_p3, %p3548_p2 }
  0x2c   :  { %3556 = shalt.err (!%p3553_p4)
}
  0x2d   :  { %s3557_s5 = scalar_lea.vmem %s25_s16, 448  ;;  %p3562_p6 = scmp.lt.s32.totalorder %s25_s16, %s25_s16 }
  0x2e   :  { %p3558_p5 = scmp.ne.s32.totalorder %s25_s16, %s3557_s5  ;;  %p3563_p7 = scmp.lt.s32.totalorder %s3557_s5, %s3557_s5 }
  0x30   :  { %p3564_p8 = por %p3563_p7, %p3562_p6 }
  0x32   :  { %p3565_p9 = pnand %p3564_p8, %p3558_p5 }
  0x34   :  { %3568 = shalt.err (!%p3565_p9)
}
  0x35   :  { %27 = dma.hbm_to_vmem [thread:$0]  %s3855_s0, 448, %s25_s16, [#allocation3]  }
  0x36   :  { %s3569_s30 = scalar_lea.hbm %s3858_s3, 8192 }
  0x37   :  { %p3570_p10 = scmp.ne.s32.totalorder %s3858_s3, %s3569_s30  ;;  %p3573_p11 = scmp.lt.u32.totalorder %s3569_s30, %s3858_s3 }
  0x39   :  { %p3575_p12 = pnand %p3573_p11, %p3570_p10 }
  0x3b   :  { %3578 = shalt.err (!%p3575_p12)
}
  0x3c   :  { %s3579_s15 = scalar_lea.vmem %s3735_s18, 8192  ;;  %p3584_p0 = scmp.lt.s32.totalorder %s3735_s18, %s3735_s18 }
  0x3d   :  { %p3580_p13 = scmp.ne.s32.totalorder %s3735_s18, %s3579_s15  ;;  %p3585_p1 = scmp.lt.s32.totalorder %s3579_s15, %s3579_s15 }
  0x3f   :  { %p3586_p2 = por %p3585_p1, %p3584_p0 }
  0x41   :  { %p3587_p3 = pnand %p3586_p2, %p3580_p13 }
  0x43   :  { %3590 = shalt.err (!%p3587_p3)
}
  0x44   :  { %s3651_s0 = smov 128   ;;  %s3652_s16 = smov 8  }
  0x45   :  { %53 = dma.hbm_to_vmem [thread:$0]  %s3858_s3, 8192, %s3735_s18, [#allocation6], %s3651_s0, %s3651_s0, %s3652_s16  }
  0x46   :  { %s3653_s20 = smov [#allocation10]   ;;  %s3591_s25 = scalar_lea.hbm %s3862_s7, 1024 }
  0x47   :  { %s75_s21 = sshll.u32 %s3653_s20, 4  ;;  %p3592_p4 = scmp.ne.s32.totalorder %s3862_s7, %s3591_s25  ;;  %s76_s21 = int_to_ptr.vmem [resolvable:$true] %s75_s21 }
  0x48   :  { %p3595_p5 = scmp.lt.u32.totalorder %s3591_s25, %s3862_s7 }
  0x4a   :  { %p3597_p6 = pnand %p3595_p5, %p3592_p4 }
  0x4c   :  { %3600 = shalt.err (!%p3597_p6)
}
  0x4d   :  { %s3601_s28 = scalar_lea.vmem %s76_s21, 1024  ;;  %p3606_p8 = scmp.lt.s32.totalorder %s76_s21, %s76_s21 }
  0x4e   :  { %p3602_p7 = scmp.ne.s32.totalorder %s76_s21, %s3601_s28  ;;  %p3607_p9 = scmp.lt.s32.totalorder %s3601_s28, %s3601_s28 }
  0x50   :  { %p3608_p10 = por %p3607_p9, %p3606_p8 }
  0x52   :  { %p3609_p11 = pnand %p3608_p10, %p3602_p7 }
  0x54   :  { %3612 = shalt.err (!%p3609_p11)
}
  0x55   :  { %81 = dma.hbm_to_vmem [thread:$0]  %s3862_s7, 1024, %s76_s21, [#allocation9], %s3647_s1, %s3647_s1, %s3648_s10  }
  0x56   :  { %3635 = dma.done.wait [#allocation3], 448  }
  0x57   :  { %3636 = vsyncadd [#allocation3], 4294966848 }
  0x58   :  { %3637 = dma.done.wait [#allocation6], 36864  }
  0x59   :  { %3638 = vsyncadd [#allocation6], 4294930432 }
  0x5a   :  { %3639 = dma.done.wait [#allocation9], 3072  }
  0x5b   :  { %3640 = vsyncadd [#allocation9], 4294964224  ;;  %v3654_v0 = vmov 0   ;;  %v3039_v1 = vld [vmem:[#allocation5 + $0x4] ss:$16 sps:$4 sm:$0xff]   ;;  %vm3656_vm0 = vmmov 0  }
  0x5c   :  { %1650 = vmatprep.mubr.bf16.mxu1 %v3654_v0  ;;  %v3041_v2 = vld [vmem:[#allocation5 + $0x604] ss:$16 sps:$4 sm:$0xff]   ;;  %1495 = vmatprep.subr.bf16.mxu0 %v3039_v1  ;;  %v3043_v3 = vld [vmem:[#allocation5] ss:$16 sps:$4 sm:$0xff]   ;;  %v3092_v34 = vld [vmem:[#allocation5 + $0xc] ss:$16 sps:$4 sm:$0xff]  }
  0x5d   :  { %v3044_v4 = vld [vmem:[#allocation5 + $0x600] ss:$16 sps:$4 sm:$0xff]   ;;  %1618 = vmatprep.subr.bf16.mxu1 %v3041_v2  ;;  %v3045_v5 = vld [vmem:[#allocation5 + $0x24] ss:$16 sps:$4 sm:$0xff]   ;;  %1496 = vmatpush1.bf16.msra.mxu0 %v3043_v3  ;;  %v3089_v35 = vld [vmem:[#allocation2 + $0x18] ss:$0 sps:$4 sm:$0xff]  }
  0x5e   :  { %1619 = vmatpush1.bf16.msra.mxu1 %v3044_v4  ;;  %v3047_v6 = vld [vmem:[#allocation5 + $0x624] ss:$16 sps:$4 sm:$0xff]   ;;  %v3049_v7 = vld [vmem:[#allocation5 + $0x20] ss:$16 sps:$4 sm:$0xff]   ;;  %1497 = vmatprep.subr.bf16.mxu0 %v3045_v5  ;;  %v3090_v36 = vld [vmem:[#allocation5 + $0x8] ss:$16 sps:$4 sm:$0xff]  }
  0x5f   :  { %v3050_v8 = vld [vmem:[#allocation5 + $0x620] ss:$16 sps:$4 sm:$0xff]   ;;  %1620 = vmatprep.subr.bf16.mxu1 %v3047_v6  ;;  %v3051_v9 = vld [vmem:[#allocation5 + $0x44] ss:$16 sps:$4 sm:$0xff]   ;;  %v3098_v39 = vld [vmem:[#allocation5 + $0x2c] ss:$16 sps:$4 sm:$0xff]  }
  0x60   :  { %v3053_v10 = vld [vmem:[#allocation5 + $0x644] ss:$16 sps:$4 sm:$0xff]   ;;  %v3055_v11 = vld [vmem:[#allocation5 + $0x40] ss:$16 sps:$4 sm:$0xff]   ;;  %v3096_v40 = vld [vmem:[#allocation5 + $0x28] ss:$16 sps:$4 sm:$0xff]  }
  0x61   :  { %v3056_v12 = vld [vmem:[#allocation5 + $0x640] ss:$16 sps:$4 sm:$0xff]   ;;  %1498 = vmatpush1.bf16.msra.mxu0 %v3049_v7  ;;  %v3057_v13 = vld [vmem:[#allocation5 + $0x64] ss:$16 sps:$4 sm:$0xff]   ;;  %v3104_v43 = vld [vmem:[#allocation5 + $0x4c] ss:$16 sps:$4 sm:$0xff]  }
  0x62   :  { %1621 = vmatpush1.bf16.msra.mxu1 %v3050_v8  ;;  %1499 = vmatprep.subr.bf16.mxu0 %v3051_v9  ;;  %v3059_v14 = vld [vmem:[#allocation5 + $0x664] ss:$16 sps:$4 sm:$0xff]   ;;  %v3061_v15 = vld [vmem:[#allocation5 + $0x60] ss:$16 sps:$4 sm:$0xff]   ;;  %v3102_v44 = vld [vmem:[#allocation5 + $0x48] ss:$16 sps:$4 sm:$0xff]  }
  0x63   :  { %1622 = vmatprep.subr.bf16.mxu1 %v3053_v10  ;;  %v3062_v16 = vld [vmem:[#allocation5 + $0x660] ss:$16 sps:$4 sm:$0xff]   ;;  %v3063_v17 = vld [vmem:[#allocation5 + $0x84] ss:$16 sps:$4 sm:$0xff]   ;;  %v3110_v47 = vld [vmem:[#allocation5 + $0x6c] ss:$16 sps:$4 sm:$0xff]  }
  0x64   :  { %v3065_v18 = vld [vmem:[#allocation5 + $0x684] ss:$16 sps:$4 sm:$0xff]   ;;  %v3067_v19 = vld [vmem:[#allocation5 + $0x80] ss:$16 sps:$4 sm:$0xff]   ;;  %v3108_v48 = vld [vmem:[#allocation5 + $0x68] ss:$16 sps:$4 sm:$0xff]  }
  0x65   :  { %1500 = vmatpush1.bf16.msra.mxu0 %v3055_v11  ;;  %v3068_v20 = vld [vmem:[#allocation5 + $0x680] ss:$16 sps:$4 sm:$0xff]   ;;  %v3069_v21 = vld [vmem:[#allocation5 + $0xa4] ss:$16 sps:$4 sm:$0xff]   ;;  %v3116_v53 = vld [vmem:[#allocation5 + $0x8c] ss:$16 sps:$4 sm:$0xff]  }
  0x66   :  { %1623 = vmatpush1.bf16.msra.mxu1 %v3056_v12  ;;  %1501 = vmatprep.subr.bf16.mxu0 %v3057_v13  ;;  %v3071_v22 = vld [vmem:[#allocation5 + $0x6a4] ss:$16 sps:$4 sm:$0xff]   ;;  %v3073_v23 = vld [vmem:[#allocation5 + $0xa0] ss:$16 sps:$4 sm:$0xff]   ;;  %v3114_v54 = vld [vmem:[#allocation5 + $0x88] ss:$16 sps:$4 sm:$0xff]  }
  0x67   :  { %1624 = vmatprep.subr.bf16.mxu1 %v3059_v14  ;;  %v3074_v24 = vld [vmem:[#allocation5 + $0x6a0] ss:$16 sps:$4 sm:$0xff]   ;;  %v3075_v25 = vld [vmem:[#allocation5 + $0xc4] ss:$16 sps:$4 sm:$0xff]   ;;  %v3122_v57 = vld [vmem:[#allocation5 + $0xac] ss:$16 sps:$4 sm:$0xff]  }
  0x68   :  { %v3077_v26 = vld [vmem:[#allocation5 + $0x6c4] ss:$16 sps:$4 sm:$0xff]   ;;  %v3079_v27 = vld [vmem:[#allocation5 + $0xc0] ss:$16 sps:$4 sm:$0xff]   ;;  %v3120_v58 = vld [vmem:[#allocation5 + $0xa8] ss:$16 sps:$4 sm:$0xff]  }
  0x69   :  { %1502 = vmatpush1.bf16.msra.mxu0 %v3061_v15  ;;  %v3080_v28 = vld [vmem:[#allocation5 + $0x6c0] ss:$16 sps:$4 sm:$0xff]   ;;  %v3081_v29 = vld [vmem:[#allocation5 + $0xe4] ss:$16 sps:$4 sm:$0xff]   ;;  %v3128_v61 = vld [vmem:[#allocation5 + $0xcc] ss:$16 sps:$4 sm:$0xff]  }
  0x6a   :  { %1625 = vmatpush1.bf16.msra.mxu1 %v3062_v16  ;;  %1503 = vmatprep.subr.bf16.mxu0 %v3063_v17  ;;  %v3083_v30 = vld [vmem:[#allocation5 + $0x6e4] ss:$16 sps:$4 sm:$0xff]   ;;  %v3085_v31 = vld [vmem:[#allocation5 + $0xe0] ss:$16 sps:$4 sm:$0xff]   ;;  %v3126_v62 = vld [vmem:[#allocation5 + $0xc8] ss:$16 sps:$4 sm:$0xff]  }
  0x6b   :  { %1626 = vmatprep.subr.bf16.mxu1 %v3065_v18  ;;  %v3086_v32 = vld [vmem:[#allocation5 + $0x6e0] ss:$16 sps:$4 sm:$0xff]   ;;  %v3087_v33 = vld [vmem:[#allocation5 + $0x104] ss:$16 sps:$4 sm:$0xff]   ;;  %v3134_v2 = vld [vmem:[#allocation5 + $0xec] ss:$16 sps:$4 sm:$0xff]  }
  0x6c   :  { %v3093_v37 = vld [vmem:[#allocation5 + $0x100] ss:$16 sps:$4 sm:$0xff]   ;;  %v3094_v38 = vld [vmem:[#allocation5 + $0x124] ss:$16 sps:$4 sm:$0xff]   ;;  %v3132_v3 = vld [vmem:[#allocation5 + $0xe8] ss:$16 sps:$4 sm:$0xff]  }
  0x6d   :  { %1504 = vmatpush1.bf16.msra.mxu0 %v3067_v19  ;;  %v3099_v41 = vld [vmem:[#allocation5 + $0x120] ss:$16 sps:$4 sm:$0xff]   ;;  %v3100_v42 = vld [vmem:[#allocation5 + $0x144] ss:$16 sps:$4 sm:$0xff]   ;;  %v3143_v6 = vld [vmem:[#allocation5 + $0x10c] ss:$16 sps:$4 sm:$0xff]  }
  0x6e   :  { %1627 = vmatpush1.bf16.msra.mxu1 %v3068_v20  ;;  %1505 = vmatprep.subr.bf16.mxu0 %v3069_v21  ;;  %v3105_v45 = vld [vmem:[#allocation5 + $0x140] ss:$16 sps:$4 sm:$0xff]   ;;  %v3106_v46 = vld [vmem:[#allocation5 + $0x164] ss:$16 sps:$4 sm:$0xff]   ;;  %v3141_v9 = vld [vmem:[#allocation5 + $0x108] ss:$16 sps:$4 sm:$0xff]  }
  0x6f   :  { %1628 = vmatprep.subr.bf16.mxu1 %v3071_v22  ;;  %v100_v49 = vld [vmem:[#allocation2] sm:$0xff]  ;;  %v3111_v50 = vld [vmem:[#allocation5 + $0x160] ss:$16 sps:$4 sm:$0xff]   ;;  %v3149_v11 = vld [vmem:[#allocation5 + $0x12c] ss:$16 sps:$4 sm:$0xff]   ;;  %s3657_s12 = smov [#allocation11]  }
  0x70   :  { %v3112_v51 = vld [vmem:[#allocation5 + $0x184] ss:$16 sps:$4 sm:$0xff]   ;;  %v2621_v52 = vcombine.high %v100_v49, %v100_v49  ;;  %v3117_v55 = vld [vmem:[#allocation5 + $0x180] ss:$16 sps:$4 sm:$0xff]   ;;  %v3782_v7 = vcombine.low %v100_v49, %v100_v49  ;;  %v3147_v13 = vld [vmem:[#allocation5 + $0x128] ss:$16 sps:$4 sm:$0xff]  }
  0x71   :  { %1506 = vmatpush1.bf16.msra.mxu0 %v3073_v23  ;;  %v3118_v56 = vld [vmem:[#allocation5 + $0x1a4] ss:$16 sps:$4 sm:$0xff]   ;;  %v3123_v59 = vld [vmem:[#allocation5 + $0x1a0] ss:$16 sps:$4 sm:$0xff]   ;;  %v3155_v15 = vld [vmem:[#allocation5 + $0x14c] ss:$16 sps:$4 sm:$0xff]  }
  0x72   :  { %1629 = vmatpush1.bf16.msra.mxu1 %v3074_v24  ;;  %1507 = vmatprep.subr.bf16.mxu0 %v3075_v25  ;;  %v3124_v60 = vld [vmem:[#allocation5 + $0x1c4] ss:$16 sps:$4 sm:$0xff]   ;;  %v3129_v63 = vld [vmem:[#allocation5 + $0x1c0] ss:$16 sps:$4 sm:$0xff]   ;;  %v3153_v17 = vld [vmem:[#allocation5 + $0x148] ss:$16 sps:$4 sm:$0xff]  }
  0x73   :  { %1630 = vmatprep.subr.bf16.mxu1 %v3077_v26  ;;  %1527 = vmatprep.mubr.bf16.mxu0 %v2621_v52  ;;  %v3130_v1 = vld [vmem:[#allocation5 + $0x1e4] ss:$16 sps:$4 sm:$0xff]   ;;  %v3135_v4 = vld [vmem:[#allocation5 + $0x1e0] ss:$16 sps:$4 sm:$0xff]   ;;  %v3161_v19 = vld [vmem:[#allocation5 + $0x16c] ss:$16 sps:$4 sm:$0xff]  }
  0x74   :  { %v3140_v5 = vld [vmem:[#allocation5 + $0x204] ss:$16 sps:$4 sm:$0xff]   ;;  %v3138_v8 = vld [vmem:[#allocation5 + $0x200] ss:$16 sps:$4 sm:$0xff]   ;;  %v3159_v21 = vld [vmem:[#allocation5 + $0x168] ss:$16 sps:$4 sm:$0xff]  }
  0x75   :  { %1508 = vmatpush1.bf16.msra.mxu0 %v3079_v27  ;;  %v3146_v10 = vld [vmem:[#allocation5 + $0x224] ss:$16 sps:$4 sm:$0xff]   ;;  %v3144_v12 = vld [vmem:[#allocation5 + $0x220] ss:$16 sps:$4 sm:$0xff]   ;;  %v3167_v23 = vld [vmem:[#allocation5 + $0x18c] ss:$16 sps:$4 sm:$0xff]  }
  0x76   :  { %1631 = vmatpush1.bf16.msra.mxu1 %v3080_v28  ;;  %1509 = vmatprep.subr.bf16.mxu0 %v3081_v29  ;;  %v3152_v14 = vld [vmem:[#allocation5 + $0x244] ss:$16 sps:$4 sm:$0xff]   ;;  %v3150_v16 = vld [vmem:[#allocation5 + $0x240] ss:$16 sps:$4 sm:$0xff]   ;;  %v3165_v25 = vld [vmem:[#allocation5 + $0x188] ss:$16 sps:$4 sm:$0xff]  }
  0x77   :  { %1632 = vmatprep.subr.bf16.mxu1 %v3083_v30  ;;  %v3158_v18 = vld [vmem:[#allocation5 + $0x264] ss:$16 sps:$4 sm:$0xff]   ;;  %v3156_v20 = vld [vmem:[#allocation5 + $0x260] ss:$16 sps:$4 sm:$0xff]   ;;  %v3173_v27 = vld [vmem:[#allocation5 + $0x1ac] ss:$16 sps:$4 sm:$0xff]  }
  0x78   :  { %v3164_v22 = vld [vmem:[#allocation5 + $0x284] ss:$16 sps:$4 sm:$0xff]   ;;  %v3162_v24 = vld [vmem:[#allocation5 + $0x280] ss:$16 sps:$4 sm:$0xff]   ;;  %v3171_v29 = vld [vmem:[#allocation5 + $0x1a8] ss:$16 sps:$4 sm:$0xff]  }
  0x79   :  { %1510 = vmatpush1.bf16.msra.mxu0 %v3085_v31  ;;  %v3170_v26 = vld [vmem:[#allocation5 + $0x2a4] ss:$16 sps:$4 sm:$0xff]   ;;  %v3168_v28 = vld [vmem:[#allocation5 + $0x2a0] ss:$16 sps:$4 sm:$0xff]   ;;  %v3179_v31 = vld [vmem:[#allocation5 + $0x1cc] ss:$16 sps:$4 sm:$0xff]  }
  0x7a   :  { %1633 = vmatpush1.bf16.msra.mxu1 %v3086_v32  ;;  %1511 = vmatprep.subr.bf16.mxu0 %v3087_v33  ;;  %v3176_v30 = vld [vmem:[#allocation5 + $0x2c4] ss:$16 sps:$4 sm:$0xff]   ;;  %v3785_v32 = vld [vmem:[#allocation2 + $0x8] sm:$0xff]  ;;  %s2609_s13 = sshll.u32 %s3657_s12, 4  ;;  %s2610_s13 = int_to_ptr.vmem [resolvable:$true] %s2609_s13 }
  0x7b   :  { %1659 = vmatprep.subr.bf16.mxu1 %v3092_v34  ;;  %v3174_v33 = vld [vmem:[#allocation5 + $0x2c0] ss:$16 sps:$4 sm:$0xff]   ;;  %v3177_v34 = vld [vmem:[#allocation5 + $0x1c8] ss:$16 sps:$4 sm:$0xff]   ;;  %v3203_v49 = vld [vmem:[#allocation5 + $0x24c] ss:$16 sps:$4 sm:$0xff]   ;;  %p3618_p13 = scmp.lt.s32.totalorder %s2610_s13, %s2610_s13 }
  0x7d   :  { %1651 = vmatmul.mubr.bf16.vlgmr.msra.gmra.mrb[0].mxu1 %v3089_v35  ;;  %1512 = vmatpush1.bf16.msra.mxu0 %v3093_v37  ;;  %v2623_v35 = vcombine.high %v3785_v32, %v3785_v32  ;;  %v3185_v37 = vld [vmem:[#allocation5 + $0x1ec] ss:$16 sps:$4 sm:$0xff]  }
  0x7e   :  { %1660 = vmatpush1.bf16.msra.mxu1 %v3090_v36  ;;  %1513 = vmatprep.subr.bf16.mxu0 %v3094_v38  ;;  %v3182_v36 = vld [vmem:[#allocation5 + $0x2e4] ss:$16 sps:$4 sm:$0xff]   ;;  %v3180_v38 = vld [vmem:[#allocation5 + $0x2e0] ss:$16 sps:$4 sm:$0xff]  }
  0x7f   :  { %1661 = vmatprep.subr.bf16.mxu1 %v3098_v39  ;;  %1691 = vmatprep.mubr.bf16.mxu1 %v2621_v52  ;;  %v3183_v39 = vld [vmem:[#allocation5 + $0x1e8] ss:$16 sps:$4 sm:$0xff]   ;;  %v3206_v52 = vld [vmem:[#allocation5 + $0x364] ss:$16 sps:$4 sm:$0xff]  }
  0x81   :  { %1514 = vmatpush1.bf16.msra.mxu0 %v3099_v41  ;;  %v3191_v41 = vld [vmem:[#allocation5 + $0x20c] ss:$16 sps:$4 sm:$0xff]  }
  0x82   :  { %1662 = vmatpush1.bf16.msra.mxu1 %v3096_v40  ;;  %1515 = vmatprep.subr.bf16.mxu0 %v3100_v42  ;;  %v3188_v40 = vld [vmem:[#allocation5 + $0x304] ss:$16 sps:$4 sm:$0xff]   ;;  %v3186_v42 = vld [vmem:[#allocation5 + $0x300] ss:$16 sps:$4 sm:$0xff]  }
  0x83   :  { %1663 = vmatprep.subr.bf16.mxu1 %v3104_v43  ;;  %v3189_v43 = vld [vmem:[#allocation5 + $0x208] ss:$16 sps:$4 sm:$0xff]  }
  0x85   :  { %1516 = vmatpush1.bf16.msra.mxu0 %v3105_v45  ;;  %v3197_v45 = vld [vmem:[#allocation5 + $0x22c] ss:$16 sps:$4 sm:$0xff]  }
  0x86   :  { %1664 = vmatpush1.bf16.msra.mxu1 %v3102_v44  ;;  %1517 = vmatprep.subr.bf16.mxu0 %v3106_v46  ;;  %v3194_v44 = vld [vmem:[#allocation5 + $0x324] ss:$16 sps:$4 sm:$0xff]   ;;  %v3192_v46 = vld [vmem:[#allocation5 + $0x320] ss:$16 sps:$4 sm:$0xff]  }
  0x87   :  { %1665 = vmatprep.subr.bf16.mxu1 %v3110_v47  ;;  %v3195_v47 = vld [vmem:[#allocation5 + $0x228] ss:$16 sps:$4 sm:$0xff]  }
  0x89   :  { %1518 = vmatpush1.bf16.msra.mxu0 %v3111_v50  ;;  %v3198_v50 = vld [vmem:[#allocation5 + $0x340] ss:$16 sps:$4 sm:$0xff]  }
  0x8a   :  { %1666 = vmatpush1.bf16.msra.mxu1 %v3108_v48  ;;  %1519 = vmatprep.subr.bf16.mxu0 %v3112_v51  ;;  %v3200_v48 = vld [vmem:[#allocation5 + $0x344] ss:$16 sps:$4 sm:$0xff]   ;;  %v3201_v51 = vld [vmem:[#allocation5 + $0x248] ss:$16 sps:$4 sm:$0xff]  }
  0x8b   :  { %1667 = vmatprep.subr.bf16.mxu1 %v3116_v53  ;;  %v3209_v53 = vld [vmem:[#allocation5 + $0x26c] ss:$16 sps:$4 sm:$0xff]  }
  0x8d   :  { %1520 = vmatpush1.bf16.msra.mxu0 %v3117_v55  ;;  %v3207_v55 = vld [vmem:[#allocation5 + $0x268] ss:$16 sps:$4 sm:$0xff]  }
  0x8e   :  { %1668 = vmatpush1.bf16.msra.mxu1 %v3114_v54  ;;  %1521 = vmatprep.subr.bf16.mxu0 %v3118_v56  ;;  %v3204_v54 = vld [vmem:[#allocation5 + $0x360] ss:$16 sps:$4 sm:$0xff]   ;;  %v3212_v56 = vld [vmem:[#allocation5 + $0x384] ss:$16 sps:$4 sm:$0xff]  }
  0x8f   :  { %1669 = vmatprep.subr.bf16.mxu1 %v3122_v57  ;;  %v3215_v57 = vld [vmem:[#allocation5 + $0x28c] ss:$16 sps:$4 sm:$0xff]  }
  0x91   :  { %1522 = vmatpush1.bf16.msra.mxu0 %v3123_v59  ;;  %v3213_v59 = vld [vmem:[#allocation5 + $0x288] ss:$16 sps:$4 sm:$0xff]  }
  0x92   :  { %1670 = vmatpush1.bf16.msra.mxu1 %v3120_v58  ;;  %1523 = vmatprep.subr.bf16.mxu0 %v3124_v60  ;;  %v3210_v58 = vld [vmem:[#allocation5 + $0x380] ss:$16 sps:$4 sm:$0xff]   ;;  %v3218_v60 = vld [vmem:[#allocation5 + $0x3a4] ss:$16 sps:$4 sm:$0xff]  }
  0x93   :  { %1671 = vmatprep.subr.bf16.mxu1 %v3128_v61  ;;  %v3221_v61 = vld [vmem:[#allocation5 + $0x2ac] ss:$16 sps:$4 sm:$0xff]  }
  0x95   :  { %1524 = vmatpush1.bf16.msra.mxu0 %v3129_v63  ;;  %v3219_v63 = vld [vmem:[#allocation5 + $0x2a8] ss:$16 sps:$4 sm:$0xff]  }
  0x96   :  { %1672 = vmatpush1.bf16.msra.mxu1 %v3126_v62  ;;  %1525 = vmatprep.subr.bf16.mxu0 %v3130_v1  ;;  %v3216_v62 = vld [vmem:[#allocation5 + $0x3a0] ss:$16 sps:$4 sm:$0xff]   ;;  %v3224_v1 = vld [vmem:[#allocation5 + $0x3c4] ss:$16 sps:$4 sm:$0xff]  }
  0x97   :  { %1673 = vmatprep.subr.bf16.mxu1 %v3134_v2  ;;  %v3227_v2 = vld [vmem:[#allocation5 + $0x2cc] ss:$16 sps:$4 sm:$0xff]  }
  0x99   :  { %1526 = vmatpush1.bf16.msra.mxu0 %v3135_v4  ;;  %v3225_v4 = vld [vmem:[#allocation5 + $0x2c8] ss:$16 sps:$4 sm:$0xff]  }
  0x9a   :  { %1674 = vmatpush1.bf16.msra.mxu1 %v3132_v3  ;;  %1536 = vmatprep.subr.bf16.mxu0 %v3140_v5  ;;  %v3222_v3 = vld [vmem:[#allocation5 + $0x3c0] ss:$16 sps:$4 sm:$0xff]   ;;  %v3230_v5 = vld [vmem:[#allocation5 + $0x3e4] ss:$16 sps:$4 sm:$0xff]  }
  0x9b   :  { %1675 = vmatprep.subr.bf16.mxu1 %v3143_v6  ;;  %v3233_v6 = vld [vmem:[#allocation5 + $0x2ec] ss:$16 sps:$4 sm:$0xff]  }
  0x9c   :  { %1528 = vmatmul.mubr.bf16.vlgmr.msra.gmra.mrb[0].mxu0 %v3782_v7 }
  0x9d   :  { %1537 = vmatpush1.bf16.msra.mxu0 %v3138_v8  ;;  %1568 = vmatprep.mubr.bf16.mxu0 %v2623_v35  ;;  %v3231_v8 = vld [vmem:[#allocation5 + $0x2e8] ss:$16 sps:$4 sm:$0xff]  }
  0x9e   :  { %1676 = vmatpush1.bf16.msra.mxu1 %v3141_v9  ;;  %1538 = vmatprep.subr.bf16.mxu0 %v3146_v10  ;;  %v3238_v9 = vld [vmem:[#allocation5 + $0x404] ss:$16 sps:$4 sm:$0xff]   ;;  %v3241_v10 = vld [vmem:[#allocation5 + $0x30c] ss:$16 sps:$4 sm:$0xff]  }
  0x9f   :  { %1677 = vmatprep.subr.bf16.mxu1 %v3149_v11  ;;  %v3792_v11 = vcombine.low %v3785_v32, %v3785_v32  ;;  %v3268_v32 = vld [vmem:[#allocation5 + $0x4a4] ss:$16 sps:$4 sm:$0xff]  }
  0xa1   :  { %1539 = vmatpush1.bf16.msra.mxu0 %v3144_v12  ;;  %v3236_v12 = vld [vmem:[#allocation5 + $0x400] ss:$16 sps:$4 sm:$0xff]  }
  0xa2   :  { %1678 = vmatpush1.bf16.msra.mxu1 %v3147_v13  ;;  %1540 = vmatprep.subr.bf16.mxu0 %v3152_v14  ;;  %v3239_v13 = vld [vmem:[#allocation5 + $0x308] ss:$16 sps:$4 sm:$0xff]   ;;  %v3244_v14 = vld [vmem:[#allocation5 + $0x424] ss:$16 sps:$4 sm:$0xff]  }
  0xa3   :  { %1679 = vmatprep.subr.bf16.mxu1 %v3155_v15  ;;  %v3247_v15 = vld [vmem:[#allocation5 + $0x32c] ss:$16 sps:$4 sm:$0xff]  }
  0xa5   :  { %1541 = vmatpush1.bf16.msra.mxu0 %v3150_v16  ;;  %v3794_v16 = vld [vmem:[#allocation2 + $0x10] sm:$0xff] }
  0xa6   :  { %1680 = vmatpush1.bf16.msra.mxu1 %v3153_v17  ;;  %1542 = vmatprep.subr.bf16.mxu0 %v3158_v18  ;;  %v3798_v17 = vcombine.high %v3794_v16, %v3794_v16  ;;  %v3242_v18 = vld [vmem:[#allocation5 + $0x420] ss:$16 sps:$4 sm:$0xff]  }
  0xa7   :  { %1681 = vmatprep.subr.bf16.mxu1 %v3161_v19  ;;  %v3245_v19 = vld [vmem:[#allocation5 + $0x328] ss:$16 sps:$4 sm:$0xff]  }
  0xa9   :  { %1543 = vmatpush1.bf16.msra.mxu0 %v3156_v20  ;;  %v3250_v20 = vld [vmem:[#allocation5 + $0x444] ss:$16 sps:$4 sm:$0xff]  }
  0xaa   :  { %1682 = vmatpush1.bf16.msra.mxu1 %v3159_v21  ;;  %1544 = vmatprep.subr.bf16.mxu0 %v3164_v22  ;;  %v3253_v21 = vld [vmem:[#allocation5 + $0x34c] ss:$16 sps:$4 sm:$0xff]   ;;  %v3248_v22 = vld [vmem:[#allocation5 + $0x440] ss:$16 sps:$4 sm:$0xff]  }
  0xab   :  { %1683 = vmatprep.subr.bf16.mxu1 %v3167_v23  ;;  %v3251_v23 = vld [vmem:[#allocation5 + $0x348] ss:$16 sps:$4 sm:$0xff]  }
  0xad   :  { %1545 = vmatpush1.bf16.msra.mxu0 %v3162_v24  ;;  %v3256_v24 = vld [vmem:[#allocation5 + $0x464] ss:$16 sps:$4 sm:$0xff]  }
  0xae   :  { %1684 = vmatpush1.bf16.msra.mxu1 %v3165_v25  ;;  %1546 = vmatprep.subr.bf16.mxu0 %v3170_v26  ;;  %v3259_v25 = vld [vmem:[#allocation5 + $0x36c] ss:$16 sps:$4 sm:$0xff]   ;;  %v3254_v26 = vld [vmem:[#allocation5 + $0x460] ss:$16 sps:$4 sm:$0xff]  }
  0xaf   :  { %1685 = vmatprep.subr.bf16.mxu1 %v3173_v27  ;;  %v3257_v27 = vld [vmem:[#allocation5 + $0x368] ss:$16 sps:$4 sm:$0xff]  }
  0xb1   :  { %1547 = vmatpush1.bf16.msra.mxu0 %v3168_v28  ;;  %v3262_v28 = vld [vmem:[#allocation5 + $0x484] ss:$16 sps:$4 sm:$0xff]  }
  0xb2   :  { %1686 = vmatpush1.bf16.msra.mxu1 %v3171_v29  ;;  %1548 = vmatprep.subr.bf16.mxu0 %v3176_v30  ;;  %v3265_v29 = vld [vmem:[#allocation5 + $0x38c] ss:$16 sps:$4 sm:$0xff]   ;;  %v3260_v30 = vld [vmem:[#allocation5 + $0x480] ss:$16 sps:$4 sm:$0xff]  }
  0xb3   :  { %1687 = vmatprep.subr.bf16.mxu1 %v3179_v31  ;;  %v3263_v31 = vld [vmem:[#allocation5 + $0x388] ss:$16 sps:$4 sm:$0xff]  }
  0xb5   :  { %1549 = vmatpush1.bf16.msra.mxu0 %v3174_v33  ;;  %v3271_v33 = vld [vmem:[#allocation5 + $0x3ac] ss:$16 sps:$4 sm:$0xff]  }
  0xb6   :  { %1688 = vmatpush1.bf16.msra.mxu1 %v3177_v34  ;;  %1550 = vmatprep.subr.bf16.mxu0 %v3182_v36  ;;  %v3266_v34 = vld [vmem:[#allocation5 + $0x4a0] ss:$16 sps:$4 sm:$0xff]   ;;  %v3274_v36 = vld [vmem:[#allocation5 + $0x4c4] ss:$16 sps:$4 sm:$0xff]  }
  0xb7   :  { %1689 = vmatprep.subr.bf16.mxu1 %v3185_v37  ;;  %v3277_v37 = vld [vmem:[#allocation5 + $0x3cc] ss:$16 sps:$4 sm:$0xff]  }
  0xb9   :  { %1551 = vmatpush1.bf16.msra.mxu0 %v3180_v38  ;;  %v3272_v38 = vld [vmem:[#allocation5 + $0x4c0] ss:$16 sps:$4 sm:$0xff]  }
  0xba   :  { %1690 = vmatpush1.bf16.msra.mxu1 %v3183_v39  ;;  %1552 = vmatprep.subr.bf16.mxu0 %v3188_v40  ;;  %v3275_v39 = vld [vmem:[#allocation5 + $0x3c8] ss:$16 sps:$4 sm:$0xff]   ;;  %v3280_v40 = vld [vmem:[#allocation5 + $0x4e4] ss:$16 sps:$4 sm:$0xff]  }
  0xbb   :  { %1700 = vmatprep.subr.bf16.mxu1 %v3191_v41  ;;  %v3283_v41 = vld [vmem:[#allocation5 + $0x3ec] ss:$16 sps:$4 sm:$0xff]  }
  0xbd   :  { %1692 = vmatmul.mubr.bf16.vlgmr.msra.gmra.mrb[4].mxu1 %v3782_v7  ;;  %1553 = vmatpush1.bf16.msra.mxu0 %v3186_v42  ;;  %v3228_v7 = vld [vmem:[#allocation5 + $0x3e0] ss:$16 sps:$4 sm:$0xff]  }
  0xbe   :  { %1701 = vmatpush1.bf16.msra.mxu1 %v3189_v43  ;;  %1554 = vmatprep.subr.bf16.mxu0 %v3194_v44  ;;  %v3278_v42 = vld [vmem:[#allocation5 + $0x4e0] ss:$16 sps:$4 sm:$0xff]   ;;  %v3281_v43 = vld [vmem:[#allocation5 + $0x3e8] ss:$16 sps:$4 sm:$0xff]   ;;  %v3286_v44 = vld [vmem:[#allocation5 + $0x504] ss:$16 sps:$4 sm:$0xff]  }
  0xbf   :  { %1702 = vmatprep.subr.bf16.mxu1 %v3197_v45  ;;  %1732 = vmatprep.mubr.bf16.mxu1 %v2623_v35  ;;  %v3269_v35 = vld [vmem:[#allocation5 + $0x3a8] ss:$16 sps:$4 sm:$0xff]   ;;  %v3289_v45 = vld [vmem:[#allocation5 + $0x40c] ss:$16 sps:$4 sm:$0xff]  }
  0xc1   :  { %1555 = vmatpush1.bf16.msra.mxu0 %v3192_v46  ;;  %v3284_v46 = vld [vmem:[#allocation5 + $0x500] ss:$16 sps:$4 sm:$0xff]  }
  0xc2   :  { %1703 = vmatpush1.bf16.msra.mxu1 %v3195_v47  ;;  %1556 = vmatprep.subr.bf16.mxu0 %v3200_v48  ;;  %v3287_v47 = vld [vmem:[#allocation5 + $0x408] ss:$16 sps:$4 sm:$0xff]   ;;  %v3292_v48 = vld [vmem:[#allocation5 + $0x524] ss:$16 sps:$4 sm:$0xff]  }
  0xc3   :  { %1704 = vmatprep.subr.bf16.mxu1 %v3203_v49  ;;  %v3295_v49 = vld [vmem:[#allocation5 + $0x42c] ss:$16 sps:$4 sm:$0xff]  }
  0xc5   :  { %1557 = vmatpush1.bf16.msra.mxu0 %v3198_v50  ;;  %v3290_v50 = vld [vmem:[#allocation5 + $0x520] ss:$16 sps:$4 sm:$0xff]  }
  0xc6   :  { %1705 = vmatpush1.bf16.msra.mxu1 %v3201_v51  ;;  %1558 = vmatprep.subr.bf16.mxu0 %v3206_v52  ;;  %v3293_v51 = vld [vmem:[#allocation5 + $0x428] ss:$16 sps:$4 sm:$0xff]   ;;  %v3298_v52 = vld [vmem:[#allocation5 + $0x544] ss:$16 sps:$4 sm:$0xff]  }
  0xc7   :  { %1706 = vmatprep.subr.bf16.mxu1 %v3209_v53  ;;  %v3301_v53 = vld [vmem:[#allocation5 + $0x44c] ss:$16 sps:$4 sm:$0xff]  }
  0xc9   :  { %1559 = vmatpush1.bf16.msra.mxu0 %v3204_v54  ;;  %v3296_v54 = vld [vmem:[#allocation5 + $0x540] ss:$16 sps:$4 sm:$0xff]  }
  0xca   :  { %1707 = vmatpush1.bf16.msra.mxu1 %v3207_v55  ;;  %1560 = vmatprep.subr.bf16.mxu0 %v3212_v56  ;;  %v3299_v55 = vld [vmem:[#allocation5 + $0x448] ss:$16 sps:$4 sm:$0xff]   ;;  %v3304_v56 = vld [vmem:[#allocation5 + $0x564] ss:$16 sps:$4 sm:$0xff]  }
  0xcb   :  { %1708 = vmatprep.subr.bf16.mxu1 %v3215_v57  ;;  %v3307_v57 = vld [vmem:[#allocation5 + $0x46c] ss:$16 sps:$4 sm:$0xff]  }
  0xcd   :  { %1561 = vmatpush1.bf16.msra.mxu0 %v3210_v58  ;;  %v3302_v58 = vld [vmem:[#allocation5 + $0x560] ss:$16 sps:$4 sm:$0xff]  }
  0xce   :  { %1709 = vmatpush1.bf16.msra.mxu1 %v3213_v59  ;;  %1562 = vmatprep.subr.bf16.mxu0 %v3218_v60  ;;  %v3305_v59 = vld [vmem:[#allocation5 + $0x468] ss:$16 sps:$4 sm:$0xff]   ;;  %v3310_v60 = vld [vmem:[#allocation5 + $0x584] ss:$16 sps:$4 sm:$0xff]  }
  0xcf   :  { %1710 = vmatprep.subr.bf16.mxu1 %v3221_v61  ;;  %v3313_v61 = vld [vmem:[#allocation5 + $0x48c] ss:$16 sps:$4 sm:$0xff]  }
  0xd1   :  { %1563 = vmatpush1.bf16.msra.mxu0 %v3216_v62  ;;  %v3308_v62 = vld [vmem:[#allocation5 + $0x580] ss:$16 sps:$4 sm:$0xff]  }
  0xd2   :  { %1711 = vmatpush1.bf16.msra.mxu1 %v3219_v63  ;;  %1564 = vmatprep.subr.bf16.mxu0 %v3224_v1  ;;  %v3311_v63 = vld [vmem:[#allocation5 + $0x488] ss:$16 sps:$4 sm:$0xff]   ;;  %v3316_v1 = vld [vmem:[#allocation5 + $0x5a4] ss:$16 sps:$4 sm:$0xff]  }
  0xd3   :  { %1712 = vmatprep.subr.bf16.mxu1 %v3227_v2  ;;  %v3319_v2 = vld [vmem:[#allocation5 + $0x4ac] ss:$16 sps:$4 sm:$0xff]  }
  0xd5   :  { %1565 = vmatpush1.bf16.msra.mxu0 %v3222_v3  ;;  %v3314_v3 = vld [vmem:[#allocation5 + $0x5a0] ss:$16 sps:$4 sm:$0xff]  }
  0xd6   :  { %1713 = vmatpush1.bf16.msra.mxu1 %v3225_v4  ;;  %1566 = vmatprep.subr.bf16.mxu0 %v3230_v5  ;;  %v3317_v4 = vld [vmem:[#allocation5 + $0x4a8] ss:$16 sps:$4 sm:$0xff]   ;;  %v3322_v5 = vld [vmem:[#allocation5 + $0x5c4] ss:$16 sps:$4 sm:$0xff]  }
  0xd7   :  { %1714 = vmatprep.subr.bf16.mxu1 %v3233_v6  ;;  %v3325_v6 = vld [vmem:[#allocation5 + $0x4cc] ss:$16 sps:$4 sm:$0xff]  }
  0xd9   :  { %1567 = vmatpush1.bf16.msra.mxu0 %v3228_v7  ;;  %v3320_v7 = vld [vmem:[#allocation5 + $0x5c0] ss:$16 sps:$4 sm:$0xff]  }
  0xda   :  { %1715 = vmatpush1.bf16.msra.mxu1 %v3231_v8  ;;  %1577 = vmatprep.subr.bf16.mxu0 %v3238_v9  ;;  %v3323_v8 = vld [vmem:[#allocation5 + $0x4c8] ss:$16 sps:$4 sm:$0xff]   ;;  %v3328_v9 = vld [vmem:[#allocation5 + $0x5e4] ss:$16 sps:$4 sm:$0xff]  }
  0xdb   :  { %1716 = vmatprep.subr.bf16.mxu1 %v3241_v10  ;;  %v3331_v10 = vld [vmem:[#allocation5 + $0x4ec] ss:$16 sps:$4 sm:$0xff]  }
  0xdc   :  { %1569 = vmatmul.mubr.bf16.vlgmr.msra.gmra.mrb[0].mxu0 %v3792_v11 }
  0xdd   :  { %1578 = vmatpush1.bf16.msra.mxu0 %v3236_v12  ;;  %1609 = vmatprep.mubr.bf16.mxu0 %v3798_v17  ;;  %v3329_v12 = vld [vmem:[#allocation5 + $0x4e8] ss:$16 sps:$4 sm:$0xff]  }
  0xde   :  { %1717 = vmatpush1.bf16.msra.mxu1 %v3239_v13  ;;  %1579 = vmatprep.subr.bf16.mxu0 %v3244_v14  ;;  %v3336_v13 = vld [vmem:[#allocation5 + $0x50c] ss:$16 sps:$4 sm:$0xff]  }
  0xdf   :  { %1718 = vmatprep.subr.bf16.mxu1 %v3247_v15  ;;  %v3384_v14 = vld [vmem:[#allocation7 + $0x4] ss:$8 sps:$4 sm:$0xff]   ;;  %v3334_v15 = vld [vmem:[#allocation5 + $0x508] ss:$16 sps:$4 sm:$0xff]  }
  0xe1   :  { %1580 = vmatpush1.bf16.msra.mxu0 %v3242_v18  ;;  %v3806_v18 = vcombine.low %v3794_v16, %v3794_v16  ;;  %v3388_v16 = vld [vmem:[#allocation7 + $0x20] ss:$8 sps:$4 sm:$0xff]  }
  0xe2   :  { %1719 = vmatpush1.bf16.msra.mxu1 %v3245_v19  ;;  %1581 = vmatprep.subr.bf16.mxu0 %v3250_v20  ;;  %v3339_v19 = vld [vmem:[#allocation5 + $0x52c] ss:$16 sps:$4 sm:$0xff]  }
  0xe3   :  { %1720 = vmatprep.subr.bf16.mxu1 %v3253_v21  ;;  %v3387_v20 = vld [vmem:[#allocation7 + $0x14] ss:$8 sps:$4 sm:$0xff]   ;;  %v3337_v21 = vld [vmem:[#allocation5 + $0x528] ss:$16 sps:$4 sm:$0xff]  }
  0xe5   :  { %1582 = vmatpush1.bf16.msra.mxu0 %v3248_v22  ;;  %v3385_v22 = vld [vmem:[#allocation7 + $0x10] ss:$8 sps:$4 sm:$0xff]  }
  0xe6   :  { %1721 = vmatpush1.bf16.msra.mxu1 %v3251_v23  ;;  %1583 = vmatprep.subr.bf16.mxu0 %v3256_v24  ;;  %v3342_v23 = vld [vmem:[#allocation5 + $0x54c] ss:$16 sps:$4 sm:$0xff]  }
  0xe7   :  { %1722 = vmatprep.subr.bf16.mxu1 %v3259_v25  ;;  %v3390_v24 = vld [vmem:[#allocation7 + $0x24] ss:$8 sps:$4 sm:$0xff]   ;;  %v3340_v25 = vld [vmem:[#allocation5 + $0x548] ss:$16 sps:$4 sm:$0xff]  }
  0xe9   :  { %1584 = vmatpush1.bf16.msra.mxu0 %v3254_v26  ;;  %v3345_v26 = vld [vmem:[#allocation5 + $0x56c] ss:$16 sps:$4 sm:$0xff]  }
  0xea   :  { %1723 = vmatpush1.bf16.msra.mxu1 %v3257_v27  ;;  %1585 = vmatprep.subr.bf16.mxu0 %v3262_v28  ;;  %v3393_v27 = vld [vmem:[#allocation7 + $0x34] ss:$8 sps:$4 sm:$0xff]   ;;  %v3343_v28 = vld [vmem:[#allocation5 + $0x568] ss:$16 sps:$4 sm:$0xff]  }
  0xeb   :  { %1724 = vmatprep.subr.bf16.mxu1 %v3265_v29  ;;  %v3391_v29 = vld [vmem:[#allocation7 + $0x30] ss:$8 sps:$4 sm:$0xff]  }
  0xed   :  { %1586 = vmatpush1.bf16.msra.mxu0 %v3260_v30  ;;  %v3348_v30 = vld [vmem:[#allocation5 + $0x58c] ss:$16 sps:$4 sm:$0xff]  }
  0xee   :  { %1725 = vmatpush1.bf16.msra.mxu1 %v3263_v31  ;;  %1587 = vmatprep.subr.bf16.mxu0 %v3268_v32  ;;  %v3396_v31 = vld [vmem:[#allocation7 + $0x44] ss:$8 sps:$4 sm:$0xff]   ;;  %v3346_v32 = vld [vmem:[#allocation5 + $0x588] ss:$16 sps:$4 sm:$0xff]  }
  0xef   :  { %1726 = vmatprep.subr.bf16.mxu1 %v3271_v33  ;;  %v3394_v33 = vld [vmem:[#allocation7 + $0x40] ss:$8 sps:$4 sm:$0xff]  }
  0xf1   :  { %1588 = vmatpush1.bf16.msra.mxu0 %v3266_v34  ;;  %v3351_v34 = vld [vmem:[#allocation5 + $0x5ac] ss:$16 sps:$4 sm:$0xff]  }
  0xf2   :  { %1727 = vmatpush1.bf16.msra.mxu1 %v3269_v35  ;;  %1589 = vmatprep.subr.bf16.mxu0 %v3274_v36  ;;  %v3399_v35 = vld [vmem:[#allocation7 + $0x54] ss:$8 sps:$4 sm:$0xff]   ;;  %v3349_v36 = vld [vmem:[#allocation5 + $0x5a8] ss:$16 sps:$4 sm:$0xff]  }
  0xf3   :  { %1728 = vmatprep.subr.bf16.mxu1 %v3277_v37  ;;  %v3397_v37 = vld [vmem:[#allocation7 + $0x50] ss:$8 sps:$4 sm:$0xff]  }
  0xf5   :  { %1590 = vmatpush1.bf16.msra.mxu0 %v3272_v38  ;;  %v3354_v38 = vld [vmem:[#allocation5 + $0x5cc] ss:$16 sps:$4 sm:$0xff]  }
  0xf6   :  { %1729 = vmatpush1.bf16.msra.mxu1 %v3275_v39  ;;  %1591 = vmatprep.subr.bf16.mxu0 %v3280_v40  ;;  %v3402_v39 = vld [vmem:[#allocation7 + $0x64] ss:$8 sps:$4 sm:$0xff]   ;;  %v3352_v40 = vld [vmem:[#allocation5 + $0x5c8] ss:$16 sps:$4 sm:$0xff]  }
  0xf7   :  { %1730 = vmatprep.subr.bf16.mxu1 %v3283_v41  ;;  %v3400_v41 = vld [vmem:[#allocation7 + $0x60] ss:$8 sps:$4 sm:$0xff]  }
  0xf9   :  { %1592 = vmatpush1.bf16.msra.mxu0 %v3278_v42  ;;  %v3357_v42 = vld [vmem:[#allocation5 + $0x5ec] ss:$16 sps:$4 sm:$0xff]  }
  0xfa   :  { %1731 = vmatpush1.bf16.msra.mxu1 %v3281_v43  ;;  %1593 = vmatprep.subr.bf16.mxu0 %v3286_v44  ;;  %v3405_v43 = vld [vmem:[#allocation7 + $0x74] ss:$8 sps:$4 sm:$0xff]   ;;  %v3355_v44 = vld [vmem:[#allocation5 + $0x5e8] ss:$16 sps:$4 sm:$0xff]  }
  0xfb   :  { %1741 = vmatprep.subr.bf16.mxu1 %v3289_v45  ;;  %v3403_v45 = vld [vmem:[#allocation7 + $0x70] ss:$8 sps:$4 sm:$0xff]  }
  0xfd   :  { %1733 = vmatmul.mubr.bf16.vlgmr.msra.gmra.mrb[4].mxu1 %v3792_v11  ;;  %1594 = vmatpush1.bf16.msra.mxu0 %v3284_v46  ;;  %v3326_v11 = vld [vmem:[#allocation5 + $0x5e0] ss:$16 sps:$4 sm:$0xff]   ;;  %v3360_v46 = vld [vmem:[#allocation5 + $0x60c] ss:$16 sps:$4 sm:$0xff]  }
  0xfe   :  { %1742 = vmatpush1.bf16.msra.mxu1 %v3287_v47  ;;  %1595 = vmatprep.subr.bf16.mxu0 %v3292_v48  ;;  %v3408_v47 = vld [vmem:[#allocation7 + $0x84] ss:$8 sps:$4 sm:$0xff]   ;;  %v3358_v48 = vld [vmem:[#allocation5 + $0x608] ss:$16 sps:$4 sm:$0xff]  }
  0xff   :  { %1743 = vmatprep.subr.bf16.mxu1 %v3295_v49  ;;  %1773 = vmatprep.mubr.bf16.mxu1 %v3798_v17  ;;  %v3382_v17 = vld [vmem:[#allocation7] ss:$8 sps:$4 sm:$0xff]   ;;  %v3363_v49 = vld [vmem:[#allocation5 + $0x62c] ss:$16 sps:$4 sm:$0xff]  }
 0x101   :  { %1596 = vmatpush1.bf16.msra.mxu0 %v3290_v50  ;;  %v3406_v50 = vld [vmem:[#allocation7 + $0x80] ss:$8 sps:$4 sm:$0xff]  }
 0x102   :  { %1744 = vmatpush1.bf16.msra.mxu1 %v3293_v51  ;;  %1597 = vmatprep.subr.bf16.mxu0 %v3298_v52  ;;  %v3411_v51 = vld [vmem:[#allocation7 + $0x94] ss:$8 sps:$4 sm:$0xff]   ;;  %v3361_v52 = vld [vmem:[#allocation5 + $0x628] ss:$16 sps:$4 sm:$0xff]  }
 0x103   :  { %1745 = vmatprep.subr.bf16.mxu1 %v3301_v53  ;;  %v3366_v53 = vld [vmem:[#allocation5 + $0x64c] ss:$16 sps:$4 sm:$0xff]  }
 0x105   :  { %1598 = vmatpush1.bf16.msra.mxu0 %v3296_v54  ;;  %v3409_v54 = vld [vmem:[#allocation7 + $0x90] ss:$8 sps:$4 sm:$0xff]  }
 0x106   :  { %1746 = vmatpush1.bf16.msra.mxu1 %v3299_v55  ;;  %1599 = vmatprep.subr.bf16.mxu0 %v3304_v56  ;;  %v3414_v55 = vld [vmem:[#allocation7 + $0xa4] ss:$8 sps:$4 sm:$0xff]   ;;  %v3364_v56 = vld [vmem:[#allocation5 + $0x648] ss:$16 sps:$4 sm:$0xff]  }
 0x107   :  { %1747 = vmatprep.subr.bf16.mxu1 %v3307_v57  ;;  %v3369_v57 = vld [vmem:[#allocation5 + $0x66c] ss:$16 sps:$4 sm:$0xff]  }
 0x109   :  { %1600 = vmatpush1.bf16.msra.mxu0 %v3302_v58  ;;  %v3412_v58 = vld [vmem:[#allocation7 + $0xa0] ss:$8 sps:$4 sm:$0xff]  }
 0x10a   :  { %1748 = vmatpush1.bf16.msra.mxu1 %v3305_v59  ;;  %1601 = vmatprep.subr.bf16.mxu0 %v3310_v60  ;;  %v3417_v59 = vld [vmem:[#allocation7 + $0xb4] ss:$8 sps:$4 sm:$0xff]   ;;  %v3367_v60 = vld [vmem:[#allocation5 + $0x668] ss:$16 sps:$4 sm:$0xff]  }
 0x10b   :  { %1749 = vmatprep.subr.bf16.mxu1 %v3313_v61  ;;  %v3372_v61 = vld [vmem:[#allocation5 + $0x68c] ss:$16 sps:$4 sm:$0xff]  }
 0x10d   :  { %1602 = vmatpush1.bf16.msra.mxu0 %v3308_v62  ;;  %v3420_v62 = vld [vmem:[#allocation7 + $0xc4] ss:$8 sps:$4 sm:$0xff]  }
 0x10e   :  { %1750 = vmatpush1.bf16.msra.mxu1 %v3311_v63  ;;  %1603 = vmatprep.subr.bf16.mxu0 %v3316_v1  ;;  %v3370_v63 = vld [vmem:[#allocation5 + $0x688] ss:$16 sps:$4 sm:$0xff]   ;;  %v3375_v1 = vld [vmem:[#allocation5 + $0x6ac] ss:$16 sps:$4 sm:$0xff]  }
 0x10f   :  { %1751 = vmatprep.subr.bf16.mxu1 %v3319_v2  ;;  %v3418_v2 = vld [vmem:[#allocation7 + $0xc0] ss:$8 sps:$4 sm:$0xff]  }
 0x111   :  { %1604 = vmatpush1.bf16.msra.mxu0 %v3314_v3  ;;  %v3423_v3 = vld [vmem:[#allocation7 + $0xd4] ss:$8 sps:$4 sm:$0xff]  }
 0x112   :  { %1752 = vmatpush1.bf16.msra.mxu1 %v3317_v4  ;;  %1605 = vmatprep.subr.bf16.mxu0 %v3322_v5  ;;  %v3373_v4 = vld [vmem:[#allocation5 + $0x6a8] ss:$16 sps:$4 sm:$0xff]   ;;  %v3378_v5 = vld [vmem:[#allocation5 + $0x6cc] ss:$16 sps:$4 sm:$0xff]  }
 0x113   :  { %1753 = vmatprep.subr.bf16.mxu1 %v3325_v6  ;;  %v3421_v6 = vld [vmem:[#allocation7 + $0xd0] ss:$8 sps:$4 sm:$0xff]  }
 0x115   :  { %1606 = vmatpush1.bf16.msra.mxu0 %v3320_v7 }
 0x116   :  { %1754 = vmatpush1.bf16.msra.mxu1 %v3323_v8  ;;  %1607 = vmatprep.subr.bf16.mxu0 %v3328_v9 }
 0x117   :  { %1755 = vmatprep.subr.bf16.mxu1 %v3331_v10  ;;  %v3376_v10 = vld [vmem:[#allocation5 + $0x6c8] ss:$16 sps:$4 sm:$0xff]  }
 0x119   :  { %1608 = vmatpush1.bf16.msra.mxu0 %v3326_v11 }
 0x11a   :  { %1756 = vmatpush1.bf16.msra.mxu1 %v3329_v12  ;;  %2227 = vmatprep.subr.bf16.mxu0 %v3384_v14  ;;  %v3381_v12 = vld [vmem:[#allocation5 + $0x6ec] ss:$16 sps:$4 sm:$0xff]  }
 0x11b   :  { %1757 = vmatprep.subr.bf16.mxu1 %v3336_v13  ;;  %v3379_v13 = vld [vmem:[#allocation5 + $0x6e8] ss:$16 sps:$4 sm:$0xff]   ;;  %v3502_v14 = vld [vmem:[#allocation2 + $0x18] ss:$0 sps:$4 sm:$0xff]  }
 0x11c   :  { %1610 = vmatmul.mubr.bf16.vlgmr.msra.gmra.mrb[0].mxu0 %v3806_v18 }
 0x11d   :  { %2228 = vmatpush1.bf16.msra.mxu0 %v3382_v17  ;;  %v3424_v17 = vld [vmem:[#allocation7 + $0xe0] ss:$8 sps:$4 sm:$0xff]  }
 0x11e   :  { %1758 = vmatpush1.bf16.msra.mxu1 %v3334_v15  ;;  %2229 = vmatprep.subr.bf16.mxu0 %v3387_v20  ;;  %v3426_v15 = vld [vmem:[#allocation7 + $0xe4] ss:$8 sps:$4 sm:$0xff]  }
 0x11f   :  { %1759 = vmatprep.subr.bf16.mxu1 %v3339_v19  ;;  %v3427_v19 = vld [vmem:[#allocation7 + $0xf0] ss:$8 sps:$4 sm:$0xff]   ;;  %v3432_v20 = vld [vmem:[#allocation7 + $0x104] ss:$8 sps:$4 sm:$0xff]  }
 0x121   :  { %2230 = vmatpush1.bf16.msra.mxu0 %v3385_v22  ;;  %v3479_v22 = vld [vmem:[#allocation8] sm:$0xff]  }
 0x122   :  { %1760 = vmatpush1.bf16.msra.mxu1 %v3337_v21  ;;  %2231 = vmatprep.subr.bf16.mxu0 %v3390_v24  ;;  %v3478_v21 = vld [vmem:[#allocation8 + $0x40] sm:$0xff]   ;;  %v3481_v24 = vld [vmem:[#allocation8 + $0x8] sm:$0xff]  }
 0x123   :  { %1761 = vmatprep.subr.bf16.mxu1 %v3342_v23  ;;  %v3480_v23 = vld [vmem:[#allocation8 + $0x48] sm:$0xff]  }
 0x125   :  { %2232 = vmatpush1.bf16.msra.mxu0 %v3388_v16  ;;  %v3483_v16 = vld [vmem:[#allocation8 + $0x10] sm:$0xff]  }
 0x126   :  { %1762 = vmatpush1.bf16.msra.mxu1 %v3340_v25  ;;  %2233 = vmatprep.subr.bf16.mxu0 %v3393_v27  ;;  %v3482_v25 = vld [vmem:[#allocation8 + $0x50] sm:$0xff]   ;;  %v3485_v27 = vld [vmem:[#allocation8 + $0x18] sm:$0xff]  }
 0x127   :  { %1763 = vmatprep.subr.bf16.mxu1 %v3345_v26  ;;  %v3484_v26 = vld [vmem:[#allocation8 + $0x58] sm:$0xff]  }
 0x129   :  { %2234 = vmatpush1.bf16.msra.mxu0 %v3391_v29  ;;  %v3487_v29 = vld [vmem:[#allocation8 + $0x20] sm:$0xff]  }
 0x12a   :  { %1764 = vmatpush1.bf16.msra.mxu1 %v3343_v28  ;;  %2235 = vmatprep.subr.bf16.mxu0 %v3396_v31  ;;  %v3486_v28 = vld [vmem:[#allocation8 + $0x60] sm:$0xff]   ;;  %v3489_v31 = vld [vmem:[#allocation8 + $0x28] sm:$0xff]  }
 0x12b   :  { %1765 = vmatprep.subr.bf16.mxu1 %v3348_v30  ;;  %v3488_v30 = vld [vmem:[#allocation8 + $0x68] sm:$0xff]  }
 0x12d   :  { %2236 = vmatpush1.bf16.msra.mxu0 %v3394_v33 }
 0x12e   :  { %1766 = vmatpush1.bf16.msra.mxu1 %v3346_v32  ;;  %2237 = vmatprep.subr.bf16.mxu0 %v3399_v35  ;;  %v330_v32 = vlaneseq  ;;  %v3817_v35 = vld [vmem:[%s3857_s2] sm:$0xf] }
 0x12f   :  { %1767 = vmatprep.subr.bf16.mxu1 %v3351_v34 }
 0x130   :  { %v3811_v33 = vshrl.u32 %v330_v32, 7  ;;  %v3490_v32 = vld [vmem:[#allocation8 + $0x70] sm:$0xff]  }
 0x131   :  { %2238 = vmatpush1.bf16.msra.mxu0 %v3397_v37 }
 0x132   :  { %1768 = vmatpush1.bf16.msra.mxu1 %v3349_v36  ;;  %2239 = vmatprep.subr.bf16.mxu0 %v3402_v39  ;;  %v332_v34 = vsub.s32 0, %v3811_v33  ;;  %v336_v36 = vsub.s32 1, %v3811_v33 }
 0x133   :  { %1769 = vmatprep.subr.bf16.mxu1 %v3354_v38 }
 0x134   :  { %v333_v37 = vrot.slane %v3817_v35, %v332_v34  ;;  %v337_v38 = vrot.slane %v3817_v35, %v336_v36 }
 0x135   :  { %2240 = vmatpush1.bf16.msra.mxu0 %v3400_v41 }
 0x136   :  { %1770 = vmatpush1.bf16.msra.mxu1 %v3352_v40  ;;  %2241 = vmatprep.subr.bf16.mxu0 %v3405_v43 }
 0x137   :  { %1771 = vmatprep.subr.bf16.mxu1 %v3357_v42 }
 0x139   :  { %2242 = vmatpush1.bf16.msra.mxu0 %v3403_v45 }
 0x13a   :  { %1772 = vmatpush1.bf16.msra.mxu1 %v3355_v44  ;;  %2243 = vmatprep.subr.bf16.mxu0 %v3408_v47 }
 0x13b   :  { %1782 = vmatprep.subr.bf16.mxu1 %v3360_v46 }
 0x13d   :  { %1774 = vmatmul.mubr.bf16.vlgmr.msra.gmra.mrb[4].mxu1 %v3806_v18  ;;  %2244 = vmatpush1.bf16.msra.mxu0 %v3406_v50  ;;  %v3429_v18 = vld [vmem:[#allocation7 + $0xf4] ss:$8 sps:$4 sm:$0xff]   ;;  %v3430_v50 = vld [vmem:[#allocation7 + $0x100] ss:$8 sps:$4 sm:$0xff]  }
 0x13e   :  { %1783 = vmatpush1.bf16.msra.mxu1 %v3358_v48  ;;  %1814 = vmatprep.mubr.bf16.mxu1 %v3654_v0  ;;  %v3415_v0 = vld [vmem:[#allocation7 + $0xb0] ss:$8 sps:$4 sm:$0xff]  }
 0x13f   :  { %1784 = vmatprep.subr.bf16.mxu1 %v3363_v49  ;;  %2245 = vmatprep.subr.bf16.mxu0 %v3411_v51 }
 0x141   :  { %2246 = vmatpush1.bf16.msra.mxu0 %v3409_v54  ;;  %v3438_v54 = vld [vmem:[#allocation7 + $0x124] ss:$8 sps:$4 sm:$0xff]  }
 0x142   :  { %1785 = vmatpush1.bf16.msra.mxu1 %v3361_v52  ;;  %2247 = vmatprep.subr.bf16.mxu0 %v3414_v55  ;;  %v3435_v52 = vld [vmem:[#allocation7 + $0x114] ss:$8 sps:$4 sm:$0xff]   ;;  %v3436_v55 = vld [vmem:[#allocation7 + $0x120] ss:$8 sps:$4 sm:$0xff]  }
 0x143   :  { %1786 = vmatprep.subr.bf16.mxu1 %v3366_v53  ;;  %v3433_v53 = vld [vmem:[#allocation7 + $0x110] ss:$8 sps:$4 sm:$0xff]  }
 0x145   :  { %2248 = vmatpush1.bf16.msra.mxu0 %v3412_v58  ;;  %v3444_v58 = vld [vmem:[#allocation7 + $0x144] ss:$8 sps:$4 sm:$0xff]  }
 0x146   :  { %1787 = vmatpush1.bf16.msra.mxu1 %v3364_v56  ;;  %2249 = vmatprep.subr.bf16.mxu0 %v3417_v59  ;;  %v3441_v56 = vld [vmem:[#allocation7 + $0x134] ss:$8 sps:$4 sm:$0xff]   ;;  %v3442_v59 = vld [vmem:[#allocation7 + $0x140] ss:$8 sps:$4 sm:$0xff]  }
 0x147   :  { %1788 = vmatprep.subr.bf16.mxu1 %v3369_v57  ;;  %v3439_v57 = vld [vmem:[#allocation7 + $0x130] ss:$8 sps:$4 sm:$0xff]  }
 0x149   :  { %2250 = vmatpush1.bf16.msra.mxu0 %v3415_v0  ;;  %v3450_v0 = vld [vmem:[#allocation7 + $0x164] ss:$8 sps:$4 sm:$0xff]  }
 0x14a   :  { %1789 = vmatpush1.bf16.msra.mxu1 %v3367_v60  ;;  %2251 = vmatprep.subr.bf16.mxu0 %v3420_v62  ;;  %v3447_v60 = vld [vmem:[#allocation7 + $0x154] ss:$8 sps:$4 sm:$0xff]   ;;  %v3448_v62 = vld [vmem:[#allocation7 + $0x160] ss:$8 sps:$4 sm:$0xff]  }
 0x14b   :  { %1790 = vmatprep.subr.bf16.mxu1 %v3372_v61  ;;  %v3445_v61 = vld [vmem:[#allocation7 + $0x150] ss:$8 sps:$4 sm:$0xff]  }
 0x14d   :  { %2252 = vmatpush1.bf16.msra.mxu0 %v3418_v2  ;;  %v3456_v2 = vld [vmem:[#allocation7 + $0x184] ss:$8 sps:$4 sm:$0xff]  }
 0x14e   :  { %1791 = vmatpush1.bf16.msra.mxu1 %v3370_v63  ;;  %2253 = vmatprep.subr.bf16.mxu0 %v3423_v3  ;;  %v3453_v63 = vld [vmem:[#allocation7 + $0x174] ss:$8 sps:$4 sm:$0xff]   ;;  %v3454_v3 = vld [vmem:[#allocation7 + $0x180] ss:$8 sps:$4 sm:$0xff]  }
 0x14f   :  { %1792 = vmatprep.subr.bf16.mxu1 %v3375_v1  ;;  %v3451_v1 = vld [vmem:[#allocation7 + $0x170] ss:$8 sps:$4 sm:$0xff]  }
 0x150   :  { %v1652_v7 = vpop.f32.mrb[0].mxu1 }
 0x151   :  { %v1654_v8 = vpop.f32.mrb[1].mxu1  ;;  %2254 = vmatpush1.bf16.msra.mxu0 %v3421_v6  ;;  %v3462_v6 = vld [vmem:[#allocation7 + $0x1a4] ss:$8 sps:$4 sm:$0xff]  }
 0x152   :  { %v1656_v9 = vpop.f32.mrb[2].mxu1  ;;  %1793 = vmatpush1.bf16.msra.mxu1 %v3373_v4  ;;  %2255 = vmatprep.subr.bf16.mxu0 %v3426_v15  ;;  %v3459_v4 = vld [vmem:[#allocation7 + $0x194] ss:$8 sps:$4 sm:$0xff]   ;;  %v3469_v15 = vld [vmem:[#allocation7 + $0x1d0] ss:$8 sps:$4 sm:$0xff]  }
 0x153   :  { %v1657_v11 = vpop.f32.mrb[3].mxu1  ;;  %1794 = vmatprep.subr.bf16.mxu1 %v3378_v5  ;;  %v3457_v5 = vld [vmem:[#allocation7 + $0x190] ss:$8 sps:$4 sm:$0xff]  }
 0x154   :  { %v3463_v9 = vld [vmem:[#allocation7 + $0x1b0] ss:$8 sps:$4 sm:$0xff]   ;;  %v3466_v11 = vld [vmem:[#allocation7 + $0x1c0] ss:$8 sps:$4 sm:$0xff]  }
 0x155   :  { %2256 = vmatpush1.bf16.msra.mxu0 %v3424_v17 }
 0x156   :  { %1795 = vmatpush1.bf16.msra.mxu1 %v3376_v10  ;;  %2257 = vmatprep.subr.bf16.mxu0 %v3429_v18  ;;  %v3468_v10 = vld [vmem:[#allocation7 + $0x1c4] ss:$8 sps:$4 sm:$0xff]  }
 0x157   :  { %1796 = vmatprep.subr.bf16.mxu1 %v3381_v12  ;;  %v3471_v12 = vld [vmem:[#allocation7 + $0x1d4] ss:$8 sps:$4 sm:$0xff]   ;;  %v3474_v18 = vld [vmem:[#allocation7 + $0x1e4] ss:$8 sps:$4 sm:$0xff]  }
 0x159   :  { %2258 = vmatpush1.bf16.msra.mxu0 %v3427_v19 }
 0x15a   :  { %1797 = vmatpush1.bf16.msra.mxu1 %v3379_v13  ;;  %2268 = vmatprep.subr.bf16.mxu0 %v3432_v20  ;;  %v340_v13 = vsub.s32 2, %v3811_v33 }
 0x15b   :  { %2941 = vmatprep.subr.bf16.mxu1 %v3478_v21  ;;  %v3472_v21 = vld [vmem:[#allocation7 + $0x1e0] ss:$8 sps:$4 sm:$0xff]  }
 0x15c   :  { %v341_v17 = vrot.slane %v3817_v35, %v340_v13 }
 0x15d   :  { %1815 = vmatmul.mubr.bf16.vlgmr.msra.gmra.mrb[4].mxu1 %v3502_v14  ;;  %v344_v14 = vsub.s32 3, %v3811_v33  ;;  %v3497_v33 = vld [vmem:[#allocation10 + $0x18] sm:$0xff]  }
 0x15e   :  { %2942 = vmatpush3.bf16.msra.mxu1 %v3479_v22 }
 0x15f   :  { %2943 = vmatprep.subr.bf16.mxu1 %v3480_v23  ;;  %v345_v19 = vrot.slane %v3817_v35, %v344_v14  ;;  %v3491_v35 = vld [vmem:[#allocation8 + $0x30] sm:$0xff]  }
 0x162   :  { %2944 = vmatpush3.bf16.msra.mxu1 %v3481_v24  ;;  %v3477_v24 = vld [vmem:[#allocation7 + $0x1f4] ss:$8 sps:$4 sm:$0xff]  }
 0x163   :  { %2945 = vmatprep.subr.bf16.mxu1 %v3482_v25 }
 0x166   :  { %2946 = vmatpush3.bf16.msra.mxu1 %v3483_v16 }
 0x167   :  { %2947 = vmatprep.subr.bf16.mxu1 %v3484_v26 }
 0x16a   :  { %2948 = vmatpush3.bf16.msra.mxu1 %v3485_v27 }
 0x16b   :  { %2949 = vmatprep.subr.bf16.mxu1 %v3486_v28  ;;  %v3475_v28 = vld [vmem:[#allocation7 + $0x1f0] ss:$8 sps:$4 sm:$0xff]  }
 0x16e   :  { %2950 = vmatpush3.bf16.msra.mxu1 %v3487_v29 }
 0x16f   :  { %2951 = vmatprep.subr.bf16.mxu1 %v3488_v30 }
 0x172   :  { %2952 = vmatpush3.bf16.msra.mxu1 %v3489_v31 }
 0x173   :  { %2953 = vmatprep.subr.bf16.mxu1 %v3490_v32 }
 0x176   :  { %2954 = vmatpush3.bf16.msra.mxu1 %v3491_v35 }
 0x1ef   :  { %v1611_v39 = vpop.f32.mrb[0].mxu0 }
 0x1f0   :  { %v2992_v40 = vadd.f32 %v1611_v39, %v333_v37  ;;  %v1613_v41 = vpop.f32.mrb[1].mxu0  ;;  %v3492_v37 = vld [vmem:[#allocation8 + $0x78] sm:$0xff]   ;;  %v3655_v39 = vmov 0.0  }
 0x1f1   :  { %v2994_v42 = vadd.f32 %v1613_v41, %v337_v38  ;;  %v1615_v43 = vpop.f32.mrb[2].mxu0  ;;  %v3493_v38 = vld [vmem:[#allocation8 + $0x38] sm:$0xff]   ;;  %2955 = vmatprep.subr.bf16.mxu1 %v3492_v37 }
 0x1f2   :  { %v2993_v44 = vadd.f32 %v2992_v40, %v1652_v7  ;;  %v1616_v45 = vpop.f32.mrb[3].mxu0  ;;  %v3460_v7 = vld [vmem:[#allocation7 + $0x1a0] ss:$8 sps:$4 sm:$0xff]   ;;  %2956 = vmatpush3.bf16.msra.mxu1 %v3493_v38  ;;  %v1895_v40 = vld [vmem:[%s3859_s4] sm:$0x3] }
 0x1f3   :  { %v2995_v46 = vadd.f32 %v2994_v42, %v1654_v8  ;;  %v3465_v8 = vld [vmem:[#allocation7 + $0x1b4] ss:$8 sps:$4 sm:$0xff]   ;;  %2972 = vmatprep.subr.bf16.mxu1 %v3655_v39  ;;  %v1900_v41 = vrot.slane %v1895_v40, %v332_v34  ;;  %v1904_v42 = vrot.slane %v1895_v40, %v336_v36  ;;  %v3498_v36 = vld [vmem:[#allocation10 + $0x20] sm:$0xff]  }
 0x1f4   :  { %v1823_v47 = vmax.f32 %v2993_v44, 0.0  ;;  %v3496_v34 = vld [vmem:[#allocation10 + $0x10] sm:$0xff]  }
 0x1f5   :  { %v1824_v48 = vmax.f32 %v2995_v46, 0.0 }
 0x1f6   :  { %v1827_v51 = vpack.c.bf16 %v1823_v47, %v1823_v47 }
 0x1f7   :  { %v1828_v49 = vpack.c.bf16 %v1824_v48, %v1824_v48 }
 0x1f9   :  { %2259 = vmatprep.mubr.bf16.mxu0 %v1828_v49 }
 0x1fa   :  { %2260 = vmatmul.mubr.bf16.vlgmr.msra.gmra.mrb[4].mxu0 %v1827_v51 }
 0x1fb   :  { %2269 = vmatpush1.bf16.msra.mxu0 %v3430_v50 }
 0x1fc   :  { %2270 = vmatprep.subr.bf16.mxu0 %v3435_v52  ;;  %v3494_v52 = vld [vmem:[#allocation10] sm:$0xff]  }
 0x1ff   :  { %2271 = vmatpush1.bf16.msra.mxu0 %v3433_v53 }
 0x200   :  { %2272 = vmatprep.subr.bf16.mxu0 %v3438_v54  ;;  %v3495_v54 = vld [vmem:[#allocation10 + $0x8] sm:$0xff]  }
 0x203   :  { %2273 = vmatpush1.bf16.msra.mxu0 %v3436_v55  ;;  %v3499_v55 = vld [vmem:[#allocation10 + $0x28] sm:$0xff]  }
 0x204   :  { %2274 = vmatprep.subr.bf16.mxu0 %v3441_v56  ;;  %v3500_v56 = vld [vmem:[#allocation10 + $0x30] sm:$0xff]  }
 0x207   :  { %2275 = vmatpush1.bf16.msra.mxu0 %v3439_v57  ;;  %v3501_v57 = vld [vmem:[#allocation10 + $0x38] sm:$0xff]  }
 0x208   :  { %2276 = vmatprep.subr.bf16.mxu0 %v3444_v58 }
 0x20b   :  { %2277 = vmatpush1.bf16.msra.mxu0 %v3442_v59  ;;  %v2915_v59 = vld [vmem:[%s3861_s6] ss:$0 sm:$0xff]  ;;  %s3613_s6 = scalar_lea.vmem %s2610_s13, 64 }
 0x20c   :  { %2278 = vmatprep.subr.bf16.mxu0 %v3447_v60  ;;  %p3614_p12 = scmp.ne.s32.totalorder %s2610_s13, %s3613_s6  ;;  %p3619_p0 = scmp.lt.s32.totalorder %s3613_s6, %s3613_s6 }
 0x20e   :  { %p3620_p1 = por %p3619_p0, %p3618_p13 }
 0x20f   :  { %2279 = vmatpush1.bf16.msra.mxu0 %v3445_v61 }
 0x210   :  { %2280 = vmatprep.subr.bf16.mxu0 %v3450_v0  ;;  %p3621_p2 = pnand %p3620_p1, %p3614_p12 }
 0x213   :  { %2281 = vmatpush1.bf16.msra.mxu0 %v3448_v62 }
 0x214   :  { %2282 = vmatprep.subr.bf16.mxu0 %v3453_v63 }
 0x217   :  { %2283 = vmatpush1.bf16.msra.mxu0 %v3451_v1 }
 0x218   :  { %2284 = vmatprep.subr.bf16.mxu0 %v3456_v2 }
 0x21b   :  { %2285 = vmatpush1.bf16.msra.mxu0 %v3454_v3  ;;  %v2932_v3 = vld [vmem:[%s3863_s8] ss:$0 sm:$0xff] }
 0x21c   :  { %2286 = vmatprep.subr.bf16.mxu0 %v3459_v4 }
 0x21f   :  { %2287 = vmatpush1.bf16.msra.mxu0 %v3457_v5 }
 0x220   :  { %2288 = vmatprep.subr.bf16.mxu0 %v3462_v6 }
 0x223   :  { %2289 = vmatpush1.bf16.msra.mxu0 %v3460_v7 }
 0x224   :  { %2290 = vmatprep.subr.bf16.mxu0 %v3465_v8 }
 0x227   :  { %2291 = vmatpush1.bf16.msra.mxu0 %v3463_v9 }
 0x228   :  { %2292 = vmatprep.subr.bf16.mxu0 %v3468_v10 }
 0x22b   :  { %2293 = vmatpush1.bf16.msra.mxu0 %v3466_v11 }
 0x22c   :  { %2294 = vmatprep.subr.bf16.mxu0 %v3471_v12 }
 0x22f   :  { %2295 = vmatpush1.bf16.msra.mxu0 %v3469_v15 }
 0x230   :  { %v1816_v20 = vpop.f32.mrb[4].mxu1  ;;  %2296 = vmatprep.subr.bf16.mxu0 %v3474_v18 }
 0x231   :  { %v2996_v22 = vadd.f32 %v1816_v20, %v341_v17  ;;  %v1818_v23 = vpop.f32.mrb[5].mxu1 }
 0x232   :  { %v2997_v25 = vadd.f32 %v1818_v23, %v345_v19  ;;  %v1820_v16 = vpop.f32.mrb[6].mxu1 }
 0x233   :  { %v1821_v26 = vpop.f32.mrb[7].mxu1  ;;  %2297 = vmatpush1.bf16.msra.mxu0 %v3472_v21  ;;  %v1825_v29 = vmax.f32 %v2996_v22, 0.0 }
 0x234   :  { %v1826_v27 = vmax.f32 %v2997_v25, 0.0  ;;  %2298 = vmatprep.subr.bf16.mxu0 %v3477_v24 }
 0x235   :  { %v1829_v31 = vpack.c.bf16 %v1825_v29, %v1825_v29 }
 0x236   :  { %v1830_v30 = vpack.c.bf16 %v1826_v27, %v1826_v27 }
 0x237   :  { %2299 = vmatpush1.bf16.msra.mxu0 %v3475_v28 }
 0x238   :  { %2300 = vmatprep.mubr.bf16.mxu0 %v1830_v30 }
 0x23a   :  { %2301 = vmatmul.mubr.bf16.vlgmr.msra.gmra.mrb[4].mxu0 %v1829_v31 }
 0x30d   :  { %v2302_v43 = vpop.f32.mrb[4].mxu0 }
 0x30e   :  { %v2998_v44 = vadd.f32 %v2302_v43, %v1900_v41  ;;  %v2304_v45 = vpop.f32.mrb[5].mxu0 }
 0x30f   :  { %v2999_v46 = vadd.f32 %v2304_v45, %v1904_v42  ;;  %v2306_v47 = vpop.f32.mrb[6].mxu0 }
 0x310   :  { %v2309_v48 = vmax.f32 %v2998_v44, 0.0  ;;  %v2307_v49 = vpop.f32.mrb[7].mxu0 }
 0x311   :  { %v2310_v50 = vmax.f32 %v2999_v46, 0.0 }
 0x312   :  { %v2311_v53 = vpack.c.bf16 %v2309_v48, %v2309_v48 }
 0x313   :  { %v2312_v51 = vpack.c.bf16 %v2310_v50, %v2310_v50 }
 0x315   :  { %2480 = vmatprep.mubr.bf16.mxu1 %v2312_v51 }
 0x316   :  { %2481 = vmatmul.mubr.bf16.vlgmr.msra.gmra.mrb[8].mxu1 %v2311_v53 }
 0x317   :  { %2973 = vmatpush3.bf16.msra.mxu1 %v3494_v52  ;;  %2988 = vmatprep.mubr.msk.bf16.mxu1 %vm3656_vm0, %v3655_v39 }
 0x318   :  { %2974 = vmatprep.subr.bf16.mxu1 %v3655_v39 }
 0x31b   :  { %2975 = vmatpush3.bf16.msra.mxu1 %v3495_v54 }
 0x31c   :  { %2976 = vmatprep.subr.bf16.mxu1 %v3655_v39 }
 0x31f   :  { %2977 = vmatpush3.bf16.msra.mxu1 %v3496_v34 }
 0x320   :  { %2978 = vmatprep.subr.bf16.mxu1 %v3655_v39 }
 0x323   :  { %2979 = vmatpush3.bf16.msra.mxu1 %v3497_v33 }
 0x324   :  { %2980 = vmatprep.subr.bf16.mxu1 %v3655_v39 }
 0x327   :  { %2981 = vmatpush3.bf16.msra.mxu1 %v3498_v36 }
 0x328   :  { %2982 = vmatprep.subr.bf16.mxu1 %v3655_v39 }
 0x32b   :  { %2983 = vmatpush3.bf16.msra.mxu1 %v3499_v55 }
 0x32c   :  { %2984 = vmatprep.subr.bf16.mxu1 %v3655_v39 }
 0x32f   :  { %2985 = vmatpush3.bf16.msra.mxu1 %v3500_v56 }
 0x330   :  { %2986 = vmatprep.subr.bf16.mxu1 %v3655_v39 }
 0x333   :  { %2987 = vmatpush3.bf16.msra.mxu1 %v3501_v57 }
 0x3e9   :  { %v2957_v58 = vpop.f32.mrb[8].mxu1 }
 0x3ea   :  { %v2958_v60 = vpop.f32.mrb[9].mxu1 }
 0x3eb   :  { %v2959_v61 = vadd.f32 %v2958_v60, %v2957_v58  ;;  %v2960_v0 = vpop.f32.mrb[10].mxu1 }
 0x3ec   :  { %v2961_v62 = vpop.f32.mrb[11].mxu1 }
 0x3ed   :  { %v2483_v63 = vadd.f32 %v2959_v61, %v2915_v59 }
 0x3ef   :  { %v2488_v1 = vmax.f32 %v2483_v63, 0.0 }
 0x3f1   :  { %v2489_v2 = vpack.c.bf16 %v2488_v1, %v2488_v1 }
 0x3f3   :  { %2989 = vmatmul.mubr.bf16.vlgmr.msra.gmra.mrb[12].mxu1 %v2489_v2 }
 0x4c6   :  { %v2595_v4 = vpop.f32.mrb[12].mxu1 }
 0x4c7   :  { %v2596_v5 = vadd.f32 %v2932_v3, %v2595_v4  ;;  %v2990_v6 = vpop.f32.mrb[13].mxu1 }
 0x4c8   :  { %v2598_v7 = vpop.f32.mrb[14].mxu1 }
 0x4c9   :  { %v2601_v8 = vpack.c.bf16 %v2596_v5, %v2596_v5  ;;  %v2991_v9 = vpop.f32.mrb[15].mxu1 }
 0x4cb   :  { %2602 = vst [vmem:[#allocation11] sm:$0xf] %v2601_v8 }
 0x4cc   :  { %3624 = shalt.err (!%p3621_p2)
}
 0x4cd   :  { %s3625_s8 = scalar_lea.hbm %s3864_s9, 64 }
 0x4ce   :  { %p3626_p3 = scmp.ne.s32.totalorder %s3864_s9, %s3625_s8  ;;  %p3629_p4 = scmp.lt.u32.totalorder %s3625_s8, %s3864_s9 }
 0x4d0   :  { %p3631_p5 = pnand %p3629_p4, %p3626_p3 }
 0x4d2   :  { %3634 = shalt.err (!%p3631_p5)
}
 0x4d3   :  { %2612 = dma.vmem_to_hbm [thread:$0]  %s2610_s13, 64, %s3864_s9, [#allocation4]  }
 0x4d4   :  { %3641 = dma.done.wait [#allocation4], 64  }
 0x4d5   :  { %3642 = vsyncadd [#allocation4], 4294967232 }
 0x4d6   :  { %2616 = vsyncpa [#allocation3], 1 }
 0x4d7   :  { %2617 = vsyncpa [#allocation6], 1 }
 0x4d8   :  { %2618 = vsyncpa [#allocation9], 1 }
 0x4d9   :  { %2619 = vsyncpa [#allocation4], 1 }

</bundles_post_ra>
